<compile_context>
chip_gen: v5e
topology: v5e:2x2
jax: 0.10.0
libtpu: 0.0.40
codegen_flags: <defaults>
</compile_context>

<pallas_src>
import numpy as np

import jax
import jax.numpy as jnp
from jax import lax
from jax.experimental import pallas as pl
from jax.experimental.pallas import tpu as pltpu


def _round_up(x, m):
    return ((x + m - 1) // m) * m


def gmmconv_kernel(colind_ref, dst_ref, pseudo_ref,      # per-tile edge data
                   feat_ref, w_ref,                      # resident dense operands (bf16)
                   mu_ref, coef_ref,                     # SMEM (K, D) scalar tables
                   bias_ref,                             # (1, F) f32
                   out_ref):                             # (TILE_N, F) f32
    tile_n, F = out_ref.shape
    e_t = pseudo_ref.shape[-1]
    n_src = feat_ref.shape[0]
    K, D = mu_ref.shape

    # ---- 1. gather source features for every edge in the tile (MXU one-hot) ----
    cid = colind_ref[0]                                              # (e_t, 1) int32
    gather = jnp.where(
        lax.broadcasted_iota(jnp.int32, (e_t, n_src), 1) == cid,
        1.0, 0.0).astype(jnp.bfloat16)                               # (e_t, n_src)
    # padded edges use src = n_src -> all-zero one-hot row -> zero features
    x_e = jnp.dot(gather, feat_ref[...],
                  preferred_element_type=jnp.float32)                # (e_t, c_in)

    # ---- 2. fc on the gathered rows: bf16 inputs, f32 accumulation ----
    edge_nf = jnp.dot(x_e.astype(jnp.bfloat16), w_ref[...],
                      preferred_element_type=jnp.float32)            # (e_t, K*F)

    # ---- 3. destination one-hot segment matrix (padded edges have dst = -1) ----
    dst_row = dst_ref[0]                                             # (1, e_t) int32
    seg = jnp.where(
        lax.broadcasted_iota(jnp.int32, (tile_n, e_t), 0) == dst_row,
        1.0, 0.0)                                                    # (tile_n, e_t) f32

    # ---- 4. lane-dense gaussian weights folded into K segment matmuls ----
    p = pseudo_ref[0]                                                # (D, e_t) f32
    acc = jnp.zeros((tile_n, F), jnp.float32)
    for k in range(K):                                               # static, tiny
        logit = jnp.zeros((1, e_t), jnp.float32)
        for d in range(D):                                           # static, tiny
            diff = p[d:d + 1, :] - mu_ref[k, d]
            logit = logit + coef_ref[k, d] * diff * diff
        gk = jnp.exp(logit)                                          # (1, e_t) EUP
        acc = acc + jnp.dot(seg * gk, edge_nf[:, k * F:(k + 1) * F],
                            preferred_element_type=jnp.float32,
                            precision=lax.Precision.HIGHEST)
    out_ref[...] = acc + bias_ref[...]


def gmmconv_forward(rowptr, colind, colptr, rowind, permute,
                    feat, pseudo, w, mu, inv_sigma, bias, *, tile_n=128):
    """GMMConv forward: fc -> per-edge gaussian weights -> CSR aggregation -> bias."""
    # colptr / rowind / permute (CSC view) are only consumed by the backward pass
    # of csrmhspmm; the forward aggregation only needs (rowptr, colind).
    del colptr, rowind, permute

    N, c_in = feat.shape
    E, D = pseudo.shape
    K = mu.shape[0]
    KF = w.shape[1]
    F = KF // K

    # ---------- host-side tiling of the CSR structure (concrete metadata) ----------
    rowptr_h = np.asarray(jax.device_get(rowptr)).astype(np.int64)
    colind_h = np.asarray(jax.device_get(colind)).astype(np.int64)
    pseudo_h = np.asarray(jax.device_get(pseudo)).astype(np.float32)

    tile_n = int(min(_round_up(max(tile_n, 8), 8), _round_up(N, 8)))
    num_tiles = -(-N // tile_n)
    n_pad = num_tiles * tile_n

    rp = np.concatenate(
        [rowptr_h, np.full((n_pad - N,), rowptr_h[-1], dtype=np.int64)])
    tile_starts = rp[0:n_pad + 1:tile_n]                  # (num_tiles + 1,)
    per_tile_edges = np.diff(tile_starts)
    e_t = _round_up(max(int(per_tile_edges.max()), 1), 128)

    if E == 0:                                            # degenerate empty graph
        colind_h = np.zeros((1,), np.int64)
        pseudo_h = np.zeros((1, D), np.float32)
        dst_h = np.zeros((1,), np.int64)
    else:
        dst_h = np.repeat(np.arange(n_pad, dtype=np.int64), np.diff(rp))

    eidx = tile_starts[:-1, None] + np.arange(e_t)[None, :]      # (num_tiles, e_t)
    emask = np.arange(e_t)[None, :] < per_tile_edges[:, None]
    eidx = np.clip(eidx, 0, colind_h.shape[0] - 1)

    # Per-tile padded edge data.  Sentinels: src = N -> zero gather row,
    # dst = -1 -> zero segment column, pseudo = 0 -> finite gaussian.
    colind_t = np.where(emask, colind_h[eidx], N).astype(np.int32)
    colind_t = colind_t.reshape(num_tiles, e_t, 1)
    dst_t = np.where(
        emask, dst_h[eidx] - (np.arange(num_tiles) * tile_n)[:, None],
        -1).astype(np.int32).reshape(num_tiles, 1, e_t)
    pseudo_t = np.where(emask[:, None, :],
                        np.transpose(pseudo_h[eidx], (0, 2, 1)),
                        0.0).astype(np.float32)           # (num_tiles, D, e_t)

    coef = (-0.5) * (inv_sigma.astype(jnp.float32) ** 2)  # (K, D) SMEM table

    grid_spec = pltpu.PrefetchScalarGridSpec(
        num_scalar_prefetch=0,
        grid=(num_tiles,),
        in_specs=[
            pl.BlockSpec((1, e_t, 1), lambda t: (t, 0, 0)),      # colind (per tile)
            pl.BlockSpec((1, 1, e_t), lambda t: (t, 0, 0)),      # local dst (per tile)
            pl.BlockSpec((1, D, e_t), lambda t: (t, 0, 0)),      # pseudo (per tile)
            pl.BlockSpec((N, c_in), lambda t: (0, 0)),           # feat (VMEM resident)
            pl.BlockSpec((c_in, KF), lambda t: (0, 0)),          # fc weight
            pl.BlockSpec(memory_space=pltpu.MemorySpace.SMEM),   # mu
            pl.BlockSpec(memory_space=pltpu.MemorySpace.SMEM),   # -0.5 * inv_sigma^2
            pl.BlockSpec((1, F), lambda t: (0, 0)),              # bias
        ],
        out_specs=pl.BlockSpec((tile_n, F), lambda t: (t, 0)),
    )

    # TODO(synk): for graphs where feat (N, in_feats) no longer fits VMEM
    # (v7x: 64 MiB), add a source-node grid axis (block-sparse one-hot gather)
    # or switch step 1 to a manual DMA row-gather from HBM (memory_space=pl.ANY).
    out = pl.pallas_call(
        gmmconv_kernel,
        out_shape=jax.ShapeDtypeStruct((n_pad, F), jnp.float32),
        grid_spec=grid_spec,
        compiler_params=pltpu.CompilerParams(
            dimension_semantics=("parallel",)),
    )(jnp.asarray(colind_t), jnp.asarray(dst_t), jnp.asarray(pseudo_t),
      feat.astype(jnp.bfloat16), w.astype(jnp.bfloat16),
      mu.astype(jnp.float32), coef,
      bias.reshape(1, F).astype(jnp.float32))
    return out[:N]


def reference_forward(rowptr, colind, feat, pseudo, w, mu, inv_sigma, bias):
    """Pure-JAX reference (same bf16-input / f32-accumulate fc as the kernel)."""
    N = feat.shape[0]
    E = colind.shape[0]
    K, _ = mu.shape
    F = w.shape[1] // K
    node_feat = jnp.dot(feat.astype(jnp.bfloat16), w.astype(jnp.bfloat16),
                        preferred_element_type=jnp.float32).reshape(N, K, F)
    diff = pseudo[:, None, :] - mu[None, :, :]
    gauss = jnp.exp(jnp.sum(-0.5 * diff ** 2 * (inv_sigma[None, :, :] ** 2),
                            axis=-1))                                   # (E, K)
    msg = gauss[:, :, None] * node_feat[colind]                         # (E, K, F)
    degrees = rowptr[1:] - rowptr[:-1]
    dst = jnp.repeat(jnp.arange(N), degrees, total_repeat_length=E)
    agg = jnp.zeros((N, K, F), jnp.float32).at[dst].add(msg)
    return agg.sum(axis=1) + bias


if __name__ == "__main__":
    # Module hyper-parameters (small, consistent with __init__).
    N = 16          # number of nodes
    in_feats = 8
    out_feats = 8
    dim = 2
    n_kernels = 4

    key = jax.random.PRNGKey(0)
    k_w, k_mu, k_col, k_pse, k_feat = jax.random.split(key, 5)

    # Deterministic parameter init (matching reset_parameters distributions):
    #   fc.weight: xavier_normal with relu gain; mu ~ N(0, 0.1); inv_sigma = 1; bias = 0.
    gain = jnp.sqrt(2.0)
    fan_in, fan_out = in_feats, n_kernels * out_feats
    std = gain * jnp.sqrt(2.0 / (fan_in + fan_out))
    w = std * jax.random.normal(k_w, (in_feats, n_kernels * out_feats), jnp.float32)
    mu = 0.1 * jax.random.normal(k_mu, (n_kernels, dim), jnp.float32)
    inv_sigma = jnp.ones((n_kernels, dim), jnp.float32)
    bias = jnp.zeros((out_feats,), jnp.float32)

    # Deterministic small graph in CSR form (varying degrees 1..4, E = 40).
    degrees = (jnp.arange(N, dtype=jnp.int32) % 4) + 1
    rowptr = jnp.concatenate([jnp.zeros((1,), jnp.int32),
                              jnp.cumsum(degrees).astype(jnp.int32)])
    E = int(rowptr[-1])
    colind = jax.random.randint(k_col, (E,), 0, N, dtype=jnp.int32)

    # CSC view + permutation (only needed by the backward of csrmhspmm; unused here).
    dst = jnp.repeat(jnp.arange(N, dtype=jnp.int32), degrees,
                     total_repeat_length=E)
    permute = jnp.argsort(colind, stable=True).astype(jnp.int32)
    rowind = dst[permute]
    colptr = jnp.concatenate([
        jnp.zeros((1,), jnp.int32),
        jnp.cumsum(jnp.bincount(colind, length=N)).astype(jnp.int32)])

    # Dense inputs.
    feat = jax.random.normal(k_feat, (N, in_feats), jnp.float32)
    pseudo = jax.random.normal(k_pse, (E, dim), jnp.float32)

    out = gmmconv_forward(rowptr, colind, colptr, rowind, permute,
                          feat, pseudo, w, mu, inv_sigma, bias, tile_n=8)
    out = jax.block_until_ready(out)

    ref = reference_forward(rowptr, colind, feat, pseudo, w, mu, inv_sigma, bias)

    assert out.shape == (N, out_feats)
    err = jnp.max(jnp.abs(out - ref))
    assert jnp.allclose(out, ref, rtol=1e-4, atol=1e-4), f"max abs err = {err}"
    print("KERNEL_OK")
</pallas_src>

<mosaic_0001>
module attributes {stable_mosaic.version = 11 : i64} {
  func.func @gmmconv_kernel(%arg0: i32, %arg1: memref<1x128x1xi32, #tpu.memory_space<vmem>>, %arg2: memref<1x1x128xi32, #tpu.memory_space<vmem>>, %arg3: memref<1x2x128xf32, #tpu.memory_space<vmem>>, %arg4: memref<16x8xbf16, #tpu.memory_space<vmem>>, %arg5: memref<8x32xbf16, #tpu.memory_space<vmem>>, %arg6: memref<4x2xf32, #tpu.memory_space<smem>>, %arg7: memref<4x2xf32, #tpu.memory_space<smem>>, %arg8: memref<1x8xf32, #tpu.memory_space<vmem>>, %arg9: memref<8x8xf32, #tpu.memory_space<vmem>>) attributes {dimension_semantics = [#tpu.dimension_semantics<parallel>], iteration_bounds = array<i64: 2>, scalar_prefetch = 0 : i64, scratch_operands = 0 : i64, tpu.core_type = #tpu.core_type<tc>, window_params = [{transform_indices = @transform_0, window_bounds = array<i64: 1, 128, 1>}, {transform_indices = @transform_1, window_bounds = array<i64: 1, 1, 128>}, {transform_indices = @transform_2, window_bounds = array<i64: 1, 2, 128>}, {pipeline_mode = #tpu.pipeline_mode<synchronous>, transform_indices = @transform_3, window_bounds = array<i64: 16, 8>}, {pipeline_mode = #tpu.pipeline_mode<synchronous>, transform_indices = @transform_4, window_bounds = array<i64: 8, 32>}, {transform_indices = @transform_5, window_bounds = array<i64: 4, 2>}, {transform_indices = @transform_6, window_bounds = array<i64: 4, 2>}, {pipeline_mode = #tpu.pipeline_mode<synchronous>, transform_indices = @transform_7, window_bounds = array<i64: 1, 8>}, {transform_indices = @transform_8, window_bounds = array<i64: 8, 8>}]} {
    %c0 = arith.constant 0 : index
    %c0_0 = arith.constant 0 : index
    %c0_1 = arith.constant 0 : index
    %0 = vector.load %arg1[%c0, %c0_0, %c0_1] : memref<1x128x1xi32, #tpu.memory_space<vmem>>, vector<1x128x1xi32>
    %1 = vector.shape_cast %0 : vector<1x128x1xi32> to vector<128x1xi32>
    %2 = tpu.iota {dimensions = array<i32: 1>} : vector<128x16xi32>
    %3 = vector.broadcast %1 : vector<128x1xi32> to vector<128x16xi32>
    %4 = arith.cmpi eq, %2, %3 : vector<128x16xi32>
    %cst = arith.constant 1.000000e+00 : f32
    %cst_2 = arith.constant 0.000000e+00 : f32
    %5 = vector.broadcast %cst : f32 to vector<128x16xf32>
    %6 = vector.broadcast %cst_2 : f32 to vector<128x16xf32>
    %7 = arith.select %4, %5, %6 : vector<128x16xi1>, vector<128x16xf32>
    %8 = arith.truncf %7 : vector<128x16xf32> to vector<128x16xbf16>
    %c0_3 = arith.constant 0 : index
    %c0_4 = arith.constant 0 : index
    %9 = vector.load %arg4[%c0_3, %c0_4] : memref<16x8xbf16, #tpu.memory_space<vmem>>, vector<16x8xbf16>
    %cst_5 = arith.constant dense<0.000000e+00> : vector<128x8xf32>
    %10 = tpu.matmul %8, %9, %cst_5 {dimension_numbers = #tpu.dot_dimension_numbers<[1], [0], [0], [1], [0, 0, 1, 1], [], []>} : vector<128x16xbf16>, vector<16x8xbf16>, vector<128x8xf32> -> vector<128x8xf32>
    %11 = arith.truncf %10 : vector<128x8xf32> to vector<128x8xbf16>
    %c0_6 = arith.constant 0 : index
    %c0_7 = arith.constant 0 : index
    %12 = vector.load %arg5[%c0_6, %c0_7] : memref<8x32xbf16, #tpu.memory_space<vmem>>, vector<8x32xbf16>
    %cst_8 = arith.constant dense<0.000000e+00> : vector<128x32xf32>
    %13 = tpu.matmul %11, %12, %cst_8 {dimension_numbers = #tpu.dot_dimension_numbers<[1], [0], [0], [1], [0, 0, 1, 1], [], []>} : vector<128x8xbf16>, vector<8x32xbf16>, vector<128x32xf32> -> vector<128x32xf32>
    %c0_9 = arith.constant 0 : index
    %c0_10 = arith.constant 0 : index
    %c0_11 = arith.constant 0 : index
    %14 = vector.load %arg2[%c0_9, %c0_10, %c0_11] : memref<1x1x128xi32, #tpu.memory_space<vmem>>, vector<1x1x128xi32>
    %15 = vector.shape_cast %14 : vector<1x1x128xi32> to vector<1x128xi32>
    %16 = tpu.iota {dimensions = array<i32: 0>} : vector<8x128xi32>
    %17 = vector.broadcast %15 : vector<1x128xi32> to vector<8x128xi32>
    %18 = arith.cmpi eq, %16, %17 : vector<8x128xi32>
    %cst_12 = arith.constant 1.000000e+00 : f32
    %cst_13 = arith.constant 0.000000e+00 : f32
    %19 = vector.broadcast %cst_12 : f32 to vector<8x128xf32>
    %20 = vector.broadcast %cst_13 : f32 to vector<8x128xf32>
    %21 = arith.select %18, %19, %20 : vector<8x128xi1>, vector<8x128xf32>
    %c0_14 = arith.constant 0 : index
    %c0_15 = arith.constant 0 : index
    %c0_16 = arith.constant 0 : index
    %22 = vector.load %arg3[%c0_14, %c0_15, %c0_16] : memref<1x2x128xf32, #tpu.memory_space<vmem>>, vector<1x2x128xf32>
    %23 = vector.shape_cast %22 : vector<1x2x128xf32> to vector<2x128xf32>
    %cst_17 = arith.constant 0.000000e+00 : f32
    %24 = vector.broadcast %cst_17 : f32 to vector<8x8xf32>
    %cst_18 = arith.constant 0.000000e+00 : f32
    %25 = vector.broadcast %cst_18 : f32 to vector<1x128xf32>
    %26 = vector.extract_strided_slice %23 {offsets = [0, 0], sizes = [1, 128], strides = [1, 1]} : vector<2x128xf32> to vector<1x128xf32>
    %c0_19 = arith.constant 0 : index
    %c0_20 = arith.constant 0 : index
    %27 = memref.load %arg6[%c0_19, %c0_20] : memref<4x2xf32, #tpu.memory_space<smem>>
    %28 = vector.broadcast %27 : f32 to vector<1x128xf32>
    %29 = arith.subf %26, %28 : vector<1x128xf32>
    %c0_21 = arith.constant 0 : index
    %c0_22 = arith.constant 0 : index
    %30 = memref.load %arg7[%c0_21, %c0_22] : memref<4x2xf32, #tpu.memory_space<smem>>
    %31 = vector.broadcast %30 : f32 to vector<1x128xf32>
    %32 = arith.mulf %31, %29 : vector<1x128xf32>
    %33 = arith.mulf %32, %29 : vector<1x128xf32>
    %34 = arith.addf %25, %33 : vector<1x128xf32>
    %35 = vector.extract_strided_slice %23 {offsets = [1, 0], sizes = [1, 128], strides = [1, 1]} : vector<2x128xf32> to vector<1x128xf32>
    %c0_23 = arith.constant 0 : index
    %c1 = arith.constant 1 : index
    %36 = memref.load %arg6[%c0_23, %c1] : memref<4x2xf32, #tpu.memory_space<smem>>
    %37 = vector.broadcast %36 : f32 to vector<1x128xf32>
    %38 = arith.subf %35, %37 : vector<1x128xf32>
    %c0_24 = arith.constant 0 : index
    %c1_25 = arith.constant 1 : index
    %39 = memref.load %arg7[%c0_24, %c1_25] : memref<4x2xf32, #tpu.memory_space<smem>>
    %40 = vector.broadcast %39 : f32 to vector<1x128xf32>
    %41 = arith.mulf %40, %38 : vector<1x128xf32>
    %42 = arith.mulf %41, %38 : vector<1x128xf32>
    %43 = arith.addf %34, %42 : vector<1x128xf32>
    %44 = math.exp %43 : vector<1x128xf32>
    %45 = vector.broadcast %44 : vector<1x128xf32> to vector<8x128xf32>
    %46 = arith.mulf %21, %45 : vector<8x128xf32>
    %47 = vector.extract_strided_slice %13 {offsets = [0, 0], sizes = [128, 8], strides = [1, 1]} : vector<128x32xf32> to vector<128x8xf32>
    %cst_26 = arith.constant dense<0.000000e+00> : vector<8x8xf32>
    %48 = tpu.matmul %46, %47, %cst_26 {dimension_numbers = #tpu.dot_dimension_numbers<[1], [0], [0], [1], [0, 0, 1, 1], [], []>, precision = #tpu.contract_precision<fp32>} : vector<8x128xf32>, vector<128x8xf32>, vector<8x8xf32> -> vector<8x8xf32>
    %49 = arith.addf %24, %48 : vector<8x8xf32>
    %cst_27 = arith.constant 0.000000e+00 : f32
    %50 = vector.broadcast %cst_27 : f32 to vector<1x128xf32>
    %51 = vector.extract_strided_slice %23 {offsets = [0, 0], sizes = [1, 128], strides = [1, 1]} : vector<2x128xf32> to vector<1x128xf32>
    %c1_28 = arith.constant 1 : index
    %c0_29 = arith.constant 0 : index
    %52 = memref.load %arg6[%c1_28, %c0_29] : memref<4x2xf32, #tpu.memory_space<smem>>
    %53 = vector.broadcast %52 : f32 to vector<1x128xf32>
    %54 = arith.subf %51, %53 : vector<1x128xf32>
    %c1_30 = arith.constant 1 : index
    %c0_31 = arith.constant 0 : index
    %55 = memref.load %arg7[%c1_30, %c0_31] : memref<4x2xf32, #tpu.memory_space<smem>>
    %56 = vector.broadcast %55 : f32 to vector<1x128xf32>
    %57 = arith.mulf %56, %54 : vector<1x128xf32>
    %58 = arith.mulf %57, %54 : vector<1x128xf32>
    %59 = arith.addf %50, %58 : vector<1x128xf32>
    %60 = vector.extract_strided_slice %23 {offsets = [1, 0], sizes = [1, 128], strides = [1, 1]} : vector<2x128xf32> to vector<1x128xf32>
    %c1_32 = arith.constant 1 : index
    %c1_33 = arith.constant 1 : index
    %61 = memref.load %arg6[%c1_32, %c1_33] : memref<4x2xf32, #tpu.memory_space<smem>>
    %62 = vector.broadcast %61 : f32 to vector<1x128xf32>
    %63 = arith.subf %60, %62 : vector<1x128xf32>
    %c1_34 = arith.constant 1 : index
    %c1_35 = arith.constant 1 : index
    %64 = memref.load %arg7[%c1_34, %c1_35] : memref<4x2xf32, #tpu.memory_space<smem>>
    %65 = vector.broadcast %64 : f32 to vector<1x128xf32>
    %66 = arith.mulf %65, %63 : vector<1x128xf32>
    %67 = arith.mulf %66, %63 : vector<1x128xf32>
    %68 = arith.addf %59, %67 : vector<1x128xf32>
    %69 = math.exp %68 : vector<1x128xf32>
    %70 = vector.broadcast %69 : vector<1x128xf32> to vector<8x128xf32>
    %71 = arith.mulf %21, %70 : vector<8x128xf32>
    %72 = vector.extract_strided_slice %13 {offsets = [0, 8], sizes = [128, 8], strides = [1, 1]} : vector<128x32xf32> to vector<128x8xf32>
    %cst_36 = arith.constant dense<0.000000e+00> : vector<8x8xf32>
    %73 = tpu.matmul %71, %72, %cst_36 {dimension_numbers = #tpu.dot_dimension_numbers<[1], [0], [0], [1], [0, 0, 1, 1], [], []>, precision = #tpu.contract_precision<fp32>} : vector<8x128xf32>, vector<128x8xf32>, vector<8x8xf32> -> vector<8x8xf32>
    %74 = arith.addf %49, %73 : vector<8x8xf32>
    %cst_37 = arith.constant 0.000000e+00 : f32
    %75 = vector.broadcast %cst_37 : f32 to vector<1x128xf32>
    %76 = vector.extract_strided_slice %23 {offsets = [0, 0], sizes = [1, 128], strides = [1, 1]} : vector<2x128xf32> to vector<1x128xf32>
    %c2 = arith.constant 2 : index
    %c0_38 = arith.constant 0 : index
    %77 = memref.load %arg6[%c2, %c0_38] : memref<4x2xf32, #tpu.memory_space<smem>>
    %78 = vector.broadcast %77 : f32 to vector<1x128xf32>
    %79 = arith.subf %76, %78 : vector<1x128xf32>
    %c2_39 = arith.constant 2 : index
    %c0_40 = arith.constant 0 : index
    %80 = memref.load %arg7[%c2_39, %c0_40] : memref<4x2xf32, #tpu.memory_space<smem>>
    %81 = vector.broadcast %80 : f32 to vector<1x128xf32>
    %82 = arith.mulf %81, %79 : vector<1x128xf32>
    %83 = arith.mulf %82, %79 : vector<1x128xf32>
    %84 = arith.addf %75, %83 : vector<1x128xf32>
    %85 = vector.extract_strided_slice %23 {offsets = [1, 0], sizes = [1, 128], strides = [1, 1]} : vector<2x128xf32> to vector<1x128xf32>
    %c2_41 = arith.constant 2 : index
    %c1_42 = arith.constant 1 : index
    %86 = memref.load %arg6[%c2_41, %c1_42] : memref<4x2xf32, #tpu.memory_space<smem>>
    %87 = vector.broadcast %86 : f32 to vector<1x128xf32>
    %88 = arith.subf %85, %87 : vector<1x128xf32>
    %c2_43 = arith.constant 2 : index
    %c1_44 = arith.constant 1 : index
    %89 = memref.load %arg7[%c2_43, %c1_44] : memref<4x2xf32, #tpu.memory_space<smem>>
    %90 = vector.broadcast %89 : f32 to vector<1x128xf32>
    %91 = arith.mulf %90, %88 : vector<1x128xf32>
    %92 = arith.mulf %91, %88 : vector<1x128xf32>
    %93 = arith.addf %84, %92 : vector<1x128xf32>
    %94 = math.exp %93 : vector<1x128xf32>
    %95 = vector.broadcast %94 : vector<1x128xf32> to vector<8x128xf32>
    %96 = arith.mulf %21, %95 : vector<8x128xf32>
    %97 = vector.extract_strided_slice %13 {offsets = [0, 16], sizes = [128, 8], strides = [1, 1]} : vector<128x32xf32> to vector<128x8xf32>
    %cst_45 = arith.constant dense<0.000000e+00> : vector<8x8xf32>
    %98 = tpu.matmul %96, %97, %cst_45 {dimension_numbers = #tpu.dot_dimension_numbers<[1], [0], [0], [1], [0, 0, 1, 1], [], []>, precision = #tpu.contract_precision<fp32>} : vector<8x128xf32>, vector<128x8xf32>, vector<8x8xf32> -> vector<8x8xf32>
    %99 = arith.addf %74, %98 : vector<8x8xf32>
    %cst_46 = arith.constant 0.000000e+00 : f32
    %100 = vector.broadcast %cst_46 : f32 to vector<1x128xf32>
    %101 = vector.extract_strided_slice %23 {offsets = [0, 0], sizes = [1, 128], strides = [1, 1]} : vector<2x128xf32> to vector<1x128xf32>
    %c3 = arith.constant 3 : index
    %c0_47 = arith.constant 0 : index
    %102 = memref.load %arg6[%c3, %c0_47] : memref<4x2xf32, #tpu.memory_space<smem>>
    %103 = vector.broadcast %102 : f32 to vector<1x128xf32>
    %104 = arith.subf %101, %103 : vector<1x128xf32>
    %c3_48 = arith.constant 3 : index
    %c0_49 = arith.constant 0 : index
    %105 = memref.load %arg7[%c3_48, %c0_49] : memref<4x2xf32, #tpu.memory_space<smem>>
    %106 = vector.broadcast %105 : f32 to vector<1x128xf32>
    %107 = arith.mulf %106, %104 : vector<1x128xf32>
    %108 = arith.mulf %107, %104 : vector<1x128xf32>
    %109 = arith.addf %100, %108 : vector<1x128xf32>
    %110 = vector.extract_strided_slice %23 {offsets = [1, 0], sizes = [1, 128], strides = [1, 1]} : vector<2x128xf32> to vector<1x128xf32>
    %c3_50 = arith.constant 3 : index
    %c1_51 = arith.constant 1 : index
    %111 = memref.load %arg6[%c3_50, %c1_51] : memref<4x2xf32, #tpu.memory_space<smem>>
    %112 = vector.broadcast %111 : f32 to vector<1x128xf32>
    %113 = arith.subf %110, %112 : vector<1x128xf32>
    %c3_52 = arith.constant 3 : index
    %c1_53 = arith.constant 1 : index
    %114 = memref.load %arg7[%c3_52, %c1_53] : memref<4x2xf32, #tpu.memory_space<smem>>
    %115 = vector.broadcast %114 : f32 to vector<1x128xf32>
    %116 = arith.mulf %115, %113 : vector<1x128xf32>
    %117 = arith.mulf %116, %113 : vector<1x128xf32>
    %118 = arith.addf %109, %117 : vector<1x128xf32>
    %119 = math.exp %118 : vector<1x128xf32>
    %120 = vector.broadcast %119 : vector<1x128xf32> to vector<8x128xf32>
    %121 = arith.mulf %21, %120 : vector<8x128xf32>
    %122 = vector.extract_strided_slice %13 {offsets = [0, 24], sizes = [128, 8], strides = [1, 1]} : vector<128x32xf32> to vector<128x8xf32>
    %cst_54 = arith.constant dense<0.000000e+00> : vector<8x8xf32>
    %123 = tpu.matmul %121, %122, %cst_54 {dimension_numbers = #tpu.dot_dimension_numbers<[1], [0], [0], [1], [0, 0, 1, 1], [], []>, precision = #tpu.contract_precision<fp32>} : vector<8x128xf32>, vector<128x8xf32>, vector<8x8xf32> -> vector<8x8xf32>
    %124 = arith.addf %99, %123 : vector<8x8xf32>
    %c0_55 = arith.constant 0 : index
    %c0_56 = arith.constant 0 : index
    %125 = vector.load %arg8[%c0_55, %c0_56] : memref<1x8xf32, #tpu.memory_space<vmem>>, vector<1x8xf32>
    %126 = vector.broadcast %125 : vector<1x8xf32> to vector<8x8xf32>
    %127 = arith.addf %124, %126 : vector<8x8xf32>
    %c0_57 = arith.constant 0 : index
    %c0_58 = arith.constant 0 : index
    %128 = vector.load %arg9[%c0_57, %c0_58] : memref<8x8xf32, #tpu.memory_space<vmem>>, vector<8x8xf32>
    tpu.vector_store %arg9[%c0_57, %c0_58], %127 {strides = array<i32>} : memref<8x8xf32, #tpu.memory_space<vmem>>, vector<8x8xf32>,
    return
  }
  func.func @transform_0(%arg0: i32) -> (i32, i32, i32) {
    %c0_i32 = arith.constant 0 : i32
    %c0_i32_0 = arith.constant 0 : i32
    %c0_i32_1 = arith.constant 0 : i32
    return %arg0, %c0_i32, %c0_i32_0 : i32, i32, i32
  }
  func.func @transform_1(%arg0: i32) -> (i32, i32, i32) {
    %c0_i32 = arith.constant 0 : i32
    %c0_i32_0 = arith.constant 0 : i32
    %c0_i32_1 = arith.constant 0 : i32
    return %arg0, %c0_i32, %c0_i32_0 : i32, i32, i32
  }
  func.func @transform_2(%arg0: i32) -> (i32, i32, i32) {
    %c0_i32 = arith.constant 0 : i32
    %c0_i32_0 = arith.constant 0 : i32
    %c0_i32_1 = arith.constant 0 : i32
    return %arg0, %c0_i32, %c0_i32_0 : i32, i32, i32
  }
  func.func @transform_3(%arg0: i32) -> (i32, i32) {
    %c0_i32 = arith.constant 0 : i32
    %c0_i32_0 = arith.constant 0 : i32
    %c0_i32_1 = arith.constant 0 : i32
    return %c0_i32, %c0_i32_0 : i32, i32
  }
  func.func @transform_4(%arg0: i32) -> (i32, i32) {
    %c0_i32 = arith.constant 0 : i32
    %c0_i32_0 = arith.constant 0 : i32
    %c0_i32_1 = arith.constant 0 : i32
    return %c0_i32, %c0_i32_0 : i32, i32
  }
  func.func @transform_5(%arg0: i32) -> (i32, i32) {
    %c0_i32 = arith.constant 0 : i32
    %c0_i32_0 = arith.constant 0 : i32
    %c0_i32_1 = arith.constant 0 : i32
    return %c0_i32, %c0_i32_0 : i32, i32
  }
  func.func @transform_6(%arg0: i32) -> (i32, i32) {
    %c0_i32 = arith.constant 0 : i32
    %c0_i32_0 = arith.constant 0 : i32
    %c0_i32_1 = arith.constant 0 : i32
    return %c0_i32, %c0_i32_0 : i32, i32
  }
  func.func @transform_7(%arg0: i32) -> (i32, i32) {
    %c0_i32 = arith.constant 0 : i32
    %c0_i32_0 = arith.constant 0 : i32
    %c0_i32_1 = arith.constant 0 : i32
    return %c0_i32, %c0_i32_0 : i32, i32
  }
  func.func @transform_8(%arg0: i32) -> (i32, i32) {
    %c0_i32 = arith.constant 0 : i32
    %c0_i32_0 = arith.constant 0 : i32
    return %arg0, %c0_i32 : i32, i32
  }
}

</mosaic_0001>

<bundles_post_ra>
// kernel: tpu_custom_call.1
= control target key start
LH: loop header
LB: loop body
LE: loop exit
PB: predicated region body
PF: predicated region fallthrough
CT: control target
= control target key end

     0   :  { %13 = vsyncpa [#allocation3], 0  ;;  %s3957_s0 = inlined_call_operand.vmem [shape: s32[2,128,1], index: 0, kind: input, shape index: {}]   ;;  %s3958_s1 = inlined_call_operand.vmem [shape: s32[2,1,128], index: 1, kind: input, shape index: {}]   ;;  %s3959_s2 = inlined_call_operand.vmem [shape: f32[2,2,128], index: 2, kind: input, shape index: {}]   ;;  %s3960_s3 = inlined_call_operand.vmem [shape: bf16[16,8], index: 3, kind: input, shape index: {}]   ;;  %s3961_s4 = inlined_call_operand.vmem [shape: bf16[8,32], index: 4, kind: input, shape index: {}]   ;;  %s3962_s5 = inlined_call_operand.vmem [shape: f32[4,2], index: 5, kind: input, shape index: {}]   ;;  %s3963_s6 = inlined_call_operand.vmem [shape: f32[4,2], index: 6, kind: input, shape index: {}]   ;;  %s3964_s7 = inlined_call_operand.vmem [shape: f32[1,8], index: 7, kind: input, shape index: {}]   ;;  %s3965_s8 = inlined_call_operand.vmem [shape: f32[16,8], index: 8, kind: output, shape index: {}]  }
   0x1   :  { %14 = vsyncpa [#allocation5], 0  ;;  %s2562_s27 = smov 0  }
   0x2 LB: > { %s2365_s28 = sadd.s32 4294967295, %s2508_s27   ;;  %p2367_p0 = scmp.ge.s32.totalorder %s2508_s27, 1  ;;  %s2508_s27 = sphi %s2562_s27, %s20_s27  }
   0x3   : > { %p234_p1 = scmp.lt.s32.totalorder %s2508_s27, 3  ;;  %s252_s9 = sshll.u32 %s3962_s5, 4  ;;  %s253_s9 = int_to_ptr.vmem [resolvable:$true] %s252_s9 }
   0x4   : > { %p2431_p3 = scmp.eq.s32.totalorder %s2365_s28, 0  ;;  %s262_s12 = sshll.u32 %s3963_s6, 4  ;;  %s263_s12 = int_to_ptr.vmem [resolvable:$true] %s262_s12 }
   0x5   : > { %p235_p2 = pnand %p2367_p0, %p234_p1  ;;  %s2510_s13 = smov [#allocation2]  }
   0x6   : > { %s2511_s14 = smov [#allocation4]  }
   0x7   : > { %p2424_p4 = pneg %p235_p2 }
   0x8   : > { %299 = sbr.rel (%p235_p2) target bundleno = 1059 (0x423), region = 52 }
   0x9   : > { %p2425_p5 = pnand %p2431_p3, %p2424_p4 }
   0xb   : > { %2427 = dma.vmem_to_smem (!%p2425_p5), %s253_s9, 64, %s2510_s13, [#allocation3]  }
   0xc   : > { %2430 = dma.vmem_to_smem (!%p2425_p5), %s263_s12, 64, %s2511_s14, [#allocation5]  }
   0xd   : > { %2499 = dma.done.wait (%p2431_p3), [#allocation3], 64  }
   0xe   : > { %2501 = vsyncadd (%p2431_p3), [#allocation3], 4294967232 }
   0xf   : > { %2503 = dma.done.wait (%p2431_p3), [#allocation5], 64  }
  0x10   : > { %2505 = vsyncadd (%p2431_p3), [#allocation5], 4294967232 }
  0x11   : > { %311 = sfence }
  0x12   : > { %p346_p6 = scmp.lt.s32.totalorder %s2365_s28, 1  ;;  %v2512_v0 = vmov 0   ;;  %v2415_v17 = vld [vmem:[%s3960_s3] sm:$0xff]  ;;  %v3967_v18 = vlaneseq  ;;  %v3966_v23 = vmov 0.0   ;;  %vm477_vm2 = vcmask 130048   ;;  %s2514_s23 = smov 120  }
  0x13   : > { %2451 = vset.pattern.permute.xlu1 %v2512_v0  ;;  %2450 = vset.pattern.permute.xlu0 %v2512_v0  ;;  %v559_v56 = vld [vmem:[%s3961_s4] sm:$0xf]  ;;  %vm585_vm15 = vcmask 1043456   ;;  %s2515_s24 = smov 112   ;;  %s2516_s30 = smov 104  }
  0x14   : > { %s4351_s28 = smov (!%p346_p6, %s2365_s28), 1  ;;  %2452 = vset.pattern.permute.xlu2 %v2512_v0  ;;  %509 = vmatpush.bf16.msra.mxu0 %v2415_v17  ;;  %v2609_v20 = vand.u32 127, %v3967_v18  ;;  %v587_v57 = vsel %vm585_vm15, %v559_v56, 0  ;;  %s2402_s9 = sld [smem:[#allocation2 + $0x81]] }
  0x15   : > { %s2414_s15 = sshll.u32 %s4351_s28, 7  ;;  %596 = vmatpush.bf16.msra.mxu1 %v587_v57  ;;  %s353_s29 = scalar_lea.vmem %s3958_s1, %s4351_s28 }
  0x16   : > { %s2587_s18 = scalar_lea.vmem %s3957_s0, %s2414_s15  ;;  %s2944_s10 = sld [smem:[#allocation2 + $0x80]] }
  0x17   : > { %v365_v1 = vld [vmem:[%s2587_s18 + $0x10] sm:$0xff]  ;;  %v363_v2 = vld [vmem:[%s2587_s18] sm:$0xff]  ;;  %v366_v4 = vld [vmem:[%s2587_s18 + $0x18] sm:$0xff]  ;;  %s2376_s11 = sshll.u32 %s4351_s28, 1  ;;  %s2403_s12 = sld [smem:[#allocation4 + $0x81]] }
  0x18   : > { %388 = vperm.xlu1 %2451, %v365_v1   ;;  %382 = vperm.xlu0 %2450, %v363_v2   ;;  %v367_v3 = vld [vmem:[%s2587_s18 + $0x20] sm:$0xff]  ;;  %v364_v5 = vld [vmem:[%s2587_s18 + $0x8] sm:$0xff]  ;;  %v370_v7 = vld [vmem:[%s2587_s18 + $0x38] sm:$0xff]  ;;  %s2958_s13 = sld [smem:[#allocation4 + $0x80]]  ;;  %s2967_s16 = scalar_lea.vmem %s3959_s2, %s2376_s11 }
  0x19   : > { %394 = vperm.xlu2 %2452, %v367_v3   ;;  %v368_v6 = vld [vmem:[%s2587_s18 + $0x28] sm:$0xff]  ;;  %v369_v8 = vld [vmem:[%s2587_s18 + $0x30] sm:$0xff]  ;;  %v371_v9 = vld [vmem:[%s2587_s18 + $0x40] sm:$0xff]  ;;  %s3080_s17 = sld [smem:[#allocation2 + $0x1]]  ;;  %s2377_s11 = sshll.u32 %s4351_s28, 3 }
  0x1a   : > { %v373_v10 = vld [vmem:[%s2587_s18 + $0x50] sm:$0xff]  ;;  %v372_v11 = vld [vmem:[%s2587_s18 + $0x48] sm:$0xff]  ;;  %v374_v12 = vld [vmem:[%s2587_s18 + $0x58] sm:$0xff]  ;;  %s3106_s21 = sld [smem:[#allocation4 + $0x1]] }
  0x1b   : > { %v376_v13 = vld [vmem:[%s2587_s18 + $0x68] sm:$0xff]  ;;  %v375_v14 = vld [vmem:[%s2587_s18 + $0x60] sm:$0xff]  ;;  %v377_v15 = vld [vmem:[%s2587_s18 + $0x70] sm:$0xff]  ;;  %s3122_s22 = sld [smem:[#allocation4]] }
  0x1c   : > { %v378_v16 = vld [vmem:[%s2587_s18 + $0x78] sm:$0xff]  ;;  %s3091_s18 = sld [smem:[#allocation2]] }
  0x1d   : > { %s3274_s25 = sld [smem:[#allocation4 + $0x101]] }
  0x1e   : > { %s3300_s26 = sld [smem:[#allocation4 + $0x100]] }
  0x20   : > { %391 = vperm.xlu1 %2451, %v366_v4   ;;  %385 = vperm.xlu0 %2450, %v364_v5  }
  0x21   : > { %397 = vperm.xlu2 %2452, %v368_v6  }
  0x28   : > { %403 = vperm.xlu1 %2451, %v370_v7   ;;  %400 = vperm.xlu0 %2450, %v369_v8  }
  0x29   : > { %406 = vperm.xlu2 %2452, %v371_v9  }
  0x30   : > { %412 = vperm.xlu1 %2451, %v373_v10   ;;  %409 = vperm.xlu0 %2450, %v372_v11  }
  0x31   : > { %415 = vperm.xlu2 %2452, %v374_v12  }
  0x38   : > { %421 = vperm.xlu1 %2451, %v376_v13   ;;  %418 = vperm.xlu0 %2450, %v375_v14  }
  0x39   : > { %424 = vperm.xlu2 %2452, %v377_v15  }
  0x40   : > { %427 = vperm.xlu0 %2450, %v378_v16  }
  0x73   : > { %v395_v30 = vpop.permute.xlu2 %394 }
  0x74   : > { %vm433_vm5 = vcmp.eq.s32.totalorder %v2609_v20, %v395_v30 }
  0x75   : > { %v449_v33 = vsel %vm433_vm5, 1.0, %v3966_v23 }
  0x7b   : > { %v398_v32 = vpop.permute.xlu2 %397 }
  0x7c   : > { %vm434_vm6 = vcmp.eq.s32.totalorder %v2609_v20, %v398_v32 }
  0x7d   : > { %v450_v34 = vsel %vm434_vm6, 1.0, %v3966_v23 }
  0x7e   : > { %v463_v35 = vpack.c.bf16 %v450_v34, %v449_v33 }
  0x83   : > { %v407_v42 = vpop.permute.xlu2 %406 }
  0x84   : > { %vm437_vm9 = vcmp.eq.s32.totalorder %v2609_v20, %v407_v42 }
  0x85   : > { %v453_v43 = vsel %vm437_vm9, 1.0, %v3966_v23 }
  0x8a   : > { %v383_v19 = vpop.permute.xlu0 %382  ;;  %v389_v22 = vpop.permute.xlu1 %388 }
  0x8b   : > { %vm429_vm0 = vcmp.eq.s32.totalorder %v2609_v20, %v383_v19  ;;  %vm431_vm3 = vcmp.eq.s32.totalorder %v2609_v20, %v389_v22  ;;  %v416_v46 = vpop.permute.xlu2 %415 }
  0x8c   : > { %v445_v24 = vsel %vm429_vm0, 1.0, %v3966_v23  ;;  %v447_v28 = vsel %vm431_vm3, 1.0, %v3966_v23  ;;  %vm440_vm11 = vcmp.eq.s32.totalorder %v2609_v20, %v416_v46  ;;  %vm560_vm3 = vcmask 64512  }
  0x8d   : > { %v456_v48 = vsel %vm440_vm11, 1.0, %v3966_v23 }
  0x92   : > { %v386_v21 = vpop.permute.xlu0 %385  ;;  %v392_v27 = vpop.permute.xlu1 %391 }
  0x93   : > { %vm430_vm1 = vcmp.eq.s32.totalorder %v2609_v20, %v386_v21  ;;  %vm432_vm4 = vcmp.eq.s32.totalorder %v2609_v20, %v392_v27  ;;  %v425_v59 = vpop.permute.xlu2 %424 }
  0x94   : > { %v446_v25 = vsel %vm430_vm1, 1.0, %v3966_v23  ;;  %v448_v29 = vsel %vm432_vm4, 1.0, %v3966_v23  ;;  %vm443_vm1 = vcmp.eq.s32.totalorder %v2609_v20, %v425_v59 }
  0x95   : > { %v461_v26 = vpack.c.bf16 %v446_v25, %v445_v24  ;;  %v462_v31 = vpack.c.bf16 %v448_v29, %v447_v28  ;;  %v459_v61 = vsel %vm443_vm1, 1.0, %v3966_v23 }
  0x97   : > { %2382 = vmatmul.msk.bf16.vlgmr.msra.gmra.mxu0 %vm477_vm2, %v461_v26 }
  0x9a   : > { %v404_v36 = vpop.permute.xlu1 %403  ;;  %v401_v37 = vpop.permute.xlu0 %400 }
  0x9b   : > { %vm436_vm7 = vcmp.eq.s32.totalorder %v2609_v20, %v404_v36  ;;  %vm435_vm8 = vcmp.eq.s32.totalorder %v2609_v20, %v401_v37 }
  0x9c   : > { %v452_v38 = vsel %vm436_vm7, 1.0, %v3966_v23  ;;  %v451_v39 = vsel %vm435_vm8, 1.0, %v3966_v23 }
  0x9d   : > { %v464_v40 = vpack.c.bf16 %v452_v38, %v451_v39 }
  0xa2   : > { %v410_v41 = vpop.permute.xlu0 %409  ;;  %v413_v47 = vpop.permute.xlu1 %412 }
  0xa3   : > { %vm438_vm10 = vcmp.eq.s32.totalorder %v2609_v20, %v410_v41  ;;  %vm439_vm12 = vcmp.eq.s32.totalorder %v2609_v20, %v413_v47 }
  0xa4   : > { %v454_v44 = vsel %vm438_vm10, 1.0, %v3966_v23  ;;  %v455_v49 = vsel %vm439_vm12, 1.0, %v3966_v23 }
  0xa5   : > { %v465_v45 = vpack.c.bf16 %v454_v44, %v453_v43  ;;  %v466_v50 = vpack.c.bf16 %v456_v48, %v455_v49 }
  0xa7   : > { %2383 = vmatmul.msk.bf16.gmra.mxu0 %vm477_vm2, %v462_v31 }
  0xaa   : > { %v422_v51 = vpop.permute.xlu1 %421  ;;  %v419_v52 = vpop.permute.xlu0 %418 }
  0xab   : > { %vm442_vm13 = vcmp.eq.s32.totalorder %v2609_v20, %v422_v51  ;;  %vm441_vm14 = vcmp.eq.s32.totalorder %v2609_v20, %v419_v52 }
  0xac   : > { %v458_v53 = vsel %vm442_vm13, 1.0, %v3966_v23  ;;  %v457_v54 = vsel %vm441_vm14, 1.0, %v3966_v23 }
  0xad   : > { %v467_v55 = vpack.c.bf16 %v458_v53, %v457_v54 }
  0xb2   : > { %v428_v58 = vpop.permute.xlu0 %427 }
  0xb3   : > { %vm444_vm0 = vcmp.eq.s32.totalorder %v2609_v20, %v428_v58 }
  0xb4   : > { %v460_v60 = vsel %vm444_vm0, 1.0, %v3966_v23 }
  0xb5   : > { %v468_v62 = vpack.c.bf16 %v460_v60, %v459_v61 }
  0xb7   : > { %2384 = vmatmul.msk.bf16.gmra.mxu0 %vm477_vm2, %v463_v35 }
  0xc7   : > { %2385 = vmatmul.msk.bf16.gmra.mxu0 %vm477_vm2, %v464_v40 }
  0xd7   : > { %2386 = vmatmul.msk.bf16.gmra.mxu0 %vm477_vm2, %v465_v45 }
  0xe7   : > { %2387 = vmatmul.msk.bf16.gmra.mxu0 %vm477_vm2, %v466_v50 }
  0xf7   : > { %2388 = vmatmul.msk.bf16.gmra.mxu0 %vm477_vm2, %v467_v55 }
 0x107   : > { %2389 = vmatmul.msk.bf16.gmra.mxu0 %vm477_vm2, %v468_v62 }
 0x114   : > { %v511_v63 = vpop.f32.mrf.mxu0 }
 0x11c   : > { %v513_v0 = vpop.f32.mrf.mxu0 }
 0x11d   : > { %v551_v1 = vpack.c.bf16 %v513_v0, %v511_v63 }
 0x11f   : > { %2390 = vmatmul.msk.bf16.vlgmr.msra.gmra.mxu1 %vm560_vm3, %v551_v1 }
 0x124   : > { %v516_v2 = vpop.f32.mrf.mxu0 }
 0x12c   : > { %v518_v3 = vpop.f32.mrf.mxu0 }
 0x12d   : > { %v552_v4 = vpack.c.bf16 %v518_v3, %v516_v2 }
 0x12f   : > { %2391 = vmatmul.msk.bf16.gmra.mxu1 %vm560_vm3, %v552_v4 }
 0x134   : > { %v521_v5 = vpop.f32.mrf.mxu0 }
 0x13c   : > { %v523_v6 = vpop.f32.mrf.mxu0 }
 0x13d   : > { %v553_v7 = vpack.c.bf16 %v523_v6, %v521_v5 }
 0x13f   : > { %2392 = vmatmul.msk.bf16.gmra.mxu1 %vm560_vm3, %v553_v7 }
 0x144   : > { %v526_v8 = vpop.f32.mrf.mxu0 }
 0x14c   : > { %v528_v9 = vpop.f32.mrf.mxu0 }
 0x14d   : > { %v554_v10 = vpack.c.bf16 %v528_v9, %v526_v8 }
 0x14f   : > { %2393 = vmatmul.msk.bf16.gmra.mxu1 %vm560_vm3, %v554_v10 }
 0x154   : > { %v531_v11 = vpop.f32.mrf.mxu0 }
 0x15c   : > { %v533_v12 = vpop.f32.mrf.mxu0 }
 0x15d   : > { %v555_v13 = vpack.c.bf16 %v533_v12, %v531_v11 }
 0x15f   : > { %2394 = vmatmul.msk.bf16.gmra.mxu1 %vm560_vm3, %v555_v13 }
 0x164   : > { %v536_v14 = vpop.f32.mrf.mxu0 }
 0x16c   : > { %v538_v15 = vpop.f32.mrf.mxu0 }
 0x16d   : > { %v556_v16 = vpack.c.bf16 %v538_v15, %v536_v14 }
 0x16f   : > { %2395 = vmatmul.msk.bf16.gmra.mxu1 %vm560_vm3, %v556_v16 }
 0x174   : > { %v541_v17 = vpop.f32.mrf.mxu0 }
 0x17c   : > { %v543_v19 = vpop.f32.mrf.mxu0 }
 0x17d   : > { %v557_v20 = vpack.c.bf16 %v543_v19, %v541_v17 }
 0x17f   : > { %2396 = vmatmul.msk.bf16.gmra.mxu1 %vm560_vm3, %v557_v20 }
 0x184   : > { %v546_v21 = vpop.f32.mrf.mxu0 }
 0x18c   : > { %v548_v22 = vpop.f32.mrf.mxu0 }
 0x18d   : > { %v558_v24 = vpack.c.bf16 %v548_v22, %v546_v21 }
 0x18f   : > { %2397 = vmatmul.msk.bf16.gmra.mxu1 %vm560_vm3, %v558_v24 }
 0x19c   : > { %v2662_v25 = vpop.f32.mrf.mxu1 }
 0x19d   : > { %v2859_v6 = vand.u32 4294901760, %v2662_v25 }
 0x19f   : > { %4149 = vst [vmem:[#allocation37_spill] sm:$0xff] %v2859_v6  ;;  %v2877_v8 = vsub.f32 %v2662_v25, %v2859_v6 }
 0x1a1   : > { %4151 = vst [vmem:[#allocation39_spill] sm:$0xff] %v2877_v8 }
 0x1a4   : > { %v2664_v26 = vpop.f32.mrf.mxu1 }
 0x1a5   : > { %v2850_v4 = vand.u32 4294901760, %v2664_v26 }
 0x1a7   : > { %4147 = vst [vmem:[#allocation35_spill] sm:$0xff] %v2850_v4  ;;  %v2867_v7 = vsub.f32 %v2664_v26, %v2850_v4 }
 0x1a9   : > { %4150 = vst [vmem:[#allocation38_spill] sm:$0xff] %v2867_v7 }
 0x1ac   : > { %v2666_v27 = vpop.f32.mrf.mxu1 }
 0x1ad   : > { %v2840_v2 = vand.u32 4294901760, %v2666_v27 }
 0x1af   : > { %4145 = vst [vmem:[#allocation33_spill] sm:$0xff] %v2840_v2  ;;  %v2855_v5 = vsub.f32 %v2666_v27, %v2840_v2 }
 0x1b1   : > { %4148 = vst [vmem:[#allocation36_spill] sm:$0xff] %v2855_v5 }
 0x1b4   : > { %v2668_v28 = vpop.f32.mrf.mxu1 }
 0x1b5   : > { %v2826_v0 = vand.u32 4294901760, %v2668_v28 }
 0x1b7   : > { %4143 = vst [vmem:[#allocation31_spill] sm:$0xff] %v2826_v0  ;;  %v2846_v3 = vsub.f32 %v2668_v28, %v2826_v0 }
 0x1b9   : > { %4146 = vst [vmem:[#allocation34_spill] sm:$0xff] %v2846_v3 }
 0x1bc   : > { %v2670_v29 = vpop.f32.mrf.mxu1 }
 0x1bd   : > { %v2817_v62 = vand.u32 4294901760, %v2670_v29 }
 0x1bf   : > { %4141 = vst [vmem:[#allocation29_spill] sm:$0xff] %v2817_v62  ;;  %v2837_v1 = vsub.f32 %v2670_v29, %v2817_v62 }
 0x1c1   : > { %4144 = vst [vmem:[#allocation32_spill] sm:$0xff] %v2837_v1 }
 0x1c4   : > { %v2672_v30 = vpop.f32.mrf.mxu1 }
 0x1c5   : > { %v2808_v60 = vand.u32 4294901760, %v2672_v30 }
 0x1c7   : > { %4139 = vst [vmem:[#allocation27_spill] sm:$0xff] %v2808_v60  ;;  %v2823_v63 = vsub.f32 %v2672_v30, %v2808_v60 }
 0x1c9   : > { %4142 = vst [vmem:[#allocation30_spill] sm:$0xff] %v2823_v63 }
 0x1cc   : > { %v2674_v31 = vpop.f32.mrf.mxu1 }
 0x1cd   : > { %v2799_v58 = vand.u32 4294901760, %v2674_v31 }
 0x1cf   : > { %4137 = vst [vmem:[#allocation25_spill] sm:$0xff] %v2799_v58  ;;  %v2814_v61 = vsub.f32 %v2674_v31, %v2799_v58 }
 0x1d1   : > { %4140 = vst [vmem:[#allocation28_spill] sm:$0xff] %v2814_v61 }
 0x1d4   : > { %v2676_v32 = vpop.f32.mrf.mxu1 }
 0x1d5   : > { %v2786_v56 = vand.u32 4294901760, %v2676_v32 }
 0x1d7   : > { %4135 = vst [vmem:[#allocation23_spill] sm:$0xff] %v2786_v56  ;;  %v2805_v59 = vsub.f32 %v2676_v32, %v2786_v56 }
 0x1d9   : > { %4138 = vst [vmem:[#allocation26_spill] sm:$0xff] %v2805_v59 }
 0x1dc   : > { %v2678_v33 = vpop.f32.mrf.mxu1 }
 0x1dd   : > { %v2775_v54 = vand.u32 4294901760, %v2678_v33 }
 0x1df   : > { %4133 = vst [vmem:[#allocation21_spill] sm:$0xff] %v2775_v54  ;;  %v2796_v57 = vsub.f32 %v2678_v33, %v2775_v54 }
 0x1e1   : > { %4136 = vst [vmem:[#allocation24_spill] sm:$0xff] %v2796_v57 }
 0x1e4   : > { %v2680_v34 = vpop.f32.mrf.mxu1 }
 0x1e5   : > { %v2766_v52 = vand.u32 4294901760, %v2680_v34 }
 0x1e7   : > { %4131 = vst [vmem:[#allocation19_spill] sm:$0xff] %v2766_v52  ;;  %v2783_v55 = vsub.f32 %v2680_v34, %v2766_v52 }
 0x1e9   : > { %4134 = vst [vmem:[#allocation22_spill] sm:$0xff] %v2783_v55 }
 0x1ec   : > { %v2682_v35 = vpop.f32.mrf.mxu1 }
 0x1ed   : > { %727 = vrot.lane.b32.xlu0 %v2682_v35, %s2514_s23  ;;  %v2756_v50 = vand.u32 4294901760, %v2682_v35 }
 0x1ef   : > { %4129 = vst [vmem:[#allocation17_spill] sm:$0xff] %v2756_v50  ;;  %v2771_v53 = vsub.f32 %v2682_v35, %v2756_v50 }
 0x1f1   : > { %4132 = vst [vmem:[#allocation20_spill] sm:$0xff] %v2771_v53 }
 0x1f4   : > { %v2686_v36 = vpop.f32.mrf.mxu1 }
 0x1f5   : > { %729 = vrot.lane.b32.xlu2 %v2686_v36, %s2514_s23  ;;  %v2742_v48 = vand.u32 4294901760, %v2686_v36 }
 0x1f7   : > { %4127 = vst [vmem:[#allocation15_spill] sm:$0xff] %v2742_v48  ;;  %v2762_v51 = vsub.f32 %v2686_v36, %v2742_v48 }
 0x1f9   : > { %4130 = vst [vmem:[#allocation18_spill] sm:$0xff] %v2762_v51 }
 0x1fc   : > { %v2690_v37 = vpop.f32.mrf.mxu1 }
 0x1fd   : > { %731 = vrot.lane.b32.xlu1 %v2690_v37, %s2514_s23  ;;  %v2733_v46 = vand.u32 4294901760, %v2690_v37 }
 0x1ff   : > { %4125 = vst [vmem:[#allocation13_spill] sm:$0xff] %v2733_v46  ;;  %v2753_v49 = vsub.f32 %v2690_v37, %v2733_v46 }
 0x201   : > { %4128 = vst [vmem:[#allocation16_spill] sm:$0xff] %v2753_v49 }
 0x204   : > { %v2694_v38 = vpop.f32.mrf.mxu1 }
 0x205   : > { %733 = vrot.lane.b32.xlu0 %v2694_v38, %s2514_s23  ;;  %v2724_v44 = vand.u32 4294901760, %v2694_v38 }
 0x207   : > { %4123 = vst [vmem:[#allocation11_spill] sm:$0xff] %v2724_v44  ;;  %v2739_v47 = vsub.f32 %v2694_v38, %v2724_v44 }
 0x209   : > { %4126 = vst [vmem:[#allocation14_spill] sm:$0xff] %v2739_v47 }
 0x20c   : > { %v2698_v39 = vpop.f32.mrf.mxu1 }
 0x20d   : > { %721 = vrot.lane.b32.xlu0 %v2676_v32, %s2514_s23  ;;  %735 = vrot.lane.b32.xlu2 %v2698_v39, %s2514_s23  ;;  %v2714_v42 = vand.u32 4294901760, %v2698_v39 }
 0x20f   : > { %4121 = vst [vmem:[#allocation9_spill] sm:$0xff] %v2714_v42  ;;  %v2730_v45 = vsub.f32 %v2698_v39, %v2714_v42 }
 0x211   : > { %4124 = vst [vmem:[#allocation12_spill] sm:$0xff] %v2730_v45 }
 0x214   : > { %v2704_v40 = vpop.f32.mrf.mxu1 }
 0x215   : > { %715 = vrot.lane.b32.xlu0 %v2670_v29, %s2514_s23  ;;  %723 = vrot.lane.b32.xlu2 %v2678_v33, %s2514_s23  ;;  %v2711_v41 = vand.u32 4294901760, %v2704_v40 }
 0x216   : > { %737 = vrot.lane.b32.xlu1 %v2704_v40, %s2514_s23 }
 0x217   : > { %4120 = vst [vmem:[#allocation8_spill] sm:$0xff] %v2711_v41  ;;  %1293 = vmatpush.msrb.mxu1 %v2711_v41  ;;  %v2721_v43 = vsub.f32 %v2704_v40, %v2711_v41 }
 0x219   : > { %4122 = vst [vmem:[#allocation10_spill] sm:$0xff] %v2721_v43  ;;  %1240 = vmatpush.msrb.mxu0 %v2721_v43  ;;  %1295 = vmatpush.msrb.mxu1 %v2714_v42 }
 0x21b   : > { %1243 = vmatpush.msrb.mxu0 %v2730_v45  ;;  %1297 = vmatpush.msrb.mxu1 %v2724_v44 }
 0x21d   : > { %709 = vrot.lane.b32.xlu0 %v2664_v26, %s2514_s23  ;;  %717 = vrot.lane.b32.xlu2 %v2672_v30, %s2514_s23 }
 0x21e   : > { %725 = vrot.lane.b32.xlu1 %v2680_v34, %s2514_s23  ;;  %1246 = vmatpush.msrb.mxu0 %v2739_v47 }
 0x21f   : > { %1299 = vmatpush.msrb.mxu1 %v2733_v46 }
 0x220   : > { %1249 = vmatpush.msrb.mxu0 %v2753_v49 }
 0x221   : > { %1301 = vmatpush.msrb.mxu1 %v2742_v48 }
 0x222   : > { %1252 = vmatpush.msrb.mxu0 %v2762_v51 }
 0x223   : > { %1303 = vmatpush.msrb.mxu1 %v2756_v50 }
 0x224   : > { %1255 = vmatpush.msrb.mxu0 %v2771_v53  ;;  %v657_v53 = vstv %s3106_s21 }
 0x225   : > { %1305 = vmatpush.msrb.mxu1 %v2766_v52  ;;  %1488 = vrot.lane.b32.xlu0 %v2698_v39, %s2515_s24 }
 0x226   : > { %711 = vrot.lane.b32.xlu2 %v2666_v27, %s2514_s23  ;;  %719 = vrot.lane.b32.xlu1 %v2674_v31, %s2514_s23 }
 0x227   : > { %1258 = vmatpush.msrb.mxu0 %v2783_v55  ;;  %1307 = vmatpush.msrb.mxu1 %v2775_v54 }
 0x229   : > { %1261 = vmatpush.msrb.mxu0 %v2796_v57  ;;  %1309 = vmatpush.msrb.mxu1 %v2786_v56 }
 0x22b   : > { %1264 = vmatpush.msrb.mxu0 %v2805_v59  ;;  %1311 = vmatpush.msrb.mxu1 %v2799_v58 }
 0x22d   : > { %1267 = vmatpush.msrb.mxu0 %v2814_v61  ;;  %1313 = vmatpush.msrb.mxu1 %v2808_v60  ;;  %v2453_v60 = vld [vmem:[%s353_s29] ss:$0 sm:$0xff]  ;;  %s2410_s29 = sld [smem:[#allocation2 + $0x181]] }
 0x22e   : > { %1482 = vrot.lane.b32.xlu0 %v2686_v36, %s2515_s24  ;;  %1484 = vrot.lane.b32.xlu2 %v2690_v37, %s2515_s24 }
 0x22f   : > { %713 = vrot.lane.b32.xlu1 %v2668_v28, %s2514_s23  ;;  %1270 = vmatpush.msrb.mxu0 %v2823_v63 }
 0x230   : > { %1315 = vmatpush.msrb.mxu1 %v2817_v62  ;;  %v4158_v62 = vlaneseq }
 0x231   : > { %1273 = vmatpush.msrb.mxu0 %v2837_v1 }
 0x232   : > { %1317 = vmatpush.msrb.mxu1 %v2826_v0  ;;  %v640_v63 = vshrl.u32 %v4158_v62, 7 }
 0x233   : > { %1276 = vmatpush.msrb.mxu0 %v2846_v3 }
 0x234   : > { %1319 = vmatpush.msrb.mxu1 %v2840_v2  ;;  %vm642_vm2 = vcmp.eq.s32.totalorder %v640_v63, %v2453_v60 }
 0x235   : > { %1279 = vmatpush.msrb.mxu0 %v2855_v5 }
 0x236   : > { %1321 = vmatpush.msrb.mxu1 %v2850_v4  ;;  %1476 = vrot.lane.b32.xlu0 %v2678_v33, %s2515_s24 }
 0x237   : > { %1478 = vrot.lane.b32.xlu2 %v2680_v34, %s2515_s24  ;;  %707 = vrot.lane.b32.xlu1 %v2662_v25, %s2514_s23  ;;  %s3252_s23 = sld [smem:[#allocation2 + $0x101]] }
 0x238   : > { %1282 = vmatpush.msrb.mxu0 %v2867_v7  ;;  %1323 = vmatpush.msrb.mxu1 %v2859_v6 }
 0x23a   : > { %1285 = vmatpush.msrb.mxu0 %v2877_v8 }
 0x23e   : > { %1470 = vrot.lane.b32.xlu0 %v2672_v30, %s2515_s24 }
 0x23f   : > { %1472 = vrot.lane.b32.xlu2 %v2674_v31, %s2515_s24  ;;  %1486 = vrot.lane.b32.xlu1 %v2694_v38, %s2515_s24 }
 0x246   : > { %1466 = vrot.lane.b32.xlu0 %v2668_v28, %s2515_s24 }
 0x247   : > { %1490 = vrot.lane.b32.xlu2 %v2704_v40, %s2515_s24  ;;  %1480 = vrot.lane.b32.xlu1 %v2682_v35, %s2515_s24 }
 0x24e   : > { %1899 = vrot.lane.b32.xlu0 %v2694_v38, %s2516_s30 }
 0x24f   : > { %1464 = vrot.lane.b32.xlu2 %v2666_v27, %s2515_s24  ;;  %1474 = vrot.lane.b32.xlu1 %v2676_v32, %s2515_s24  ;;  %v730_v9 = vpop.permute.xlu2 %729 }
 0x256   : > { %1460 = vrot.lane.b32.xlu0 %v2662_v25, %s2515_s24 }
 0x257   : > { %1897 = vrot.lane.b32.xlu2 %v2690_v37, %s2516_s30  ;;  %1468 = vrot.lane.b32.xlu1 %v2670_v29, %s2515_s24 }
 0x25e   : > { %1891 = vrot.lane.b32.xlu0 %v2680_v34, %s2516_s30  ;;  %v2985_v34 = vld [vmem:[%s2967_s16] sm:$0x3] }
 0x25f   : > { %1903 = vrot.lane.b32.xlu2 %v2704_v40, %s2516_s30  ;;  %1901 = vrot.lane.b32.xlu1 %v2698_v39, %s2516_s30  ;;  %v728_v11 = vpop.permute.xlu0 %727  ;;  %v669_v40 = vstv %s2944_s10  ;;  %v672_v39 = vstv %s2958_s13  ;;  %s2409_s10 = sld [smem:[#allocation4 + $0x180]] }
 0x266   : > { %1885 = vrot.lane.b32.xlu0 %v2674_v31, %s2516_s30 }
 0x267   : > { %1893 = vrot.lane.b32.xlu2 %v2682_v35, %s2516_s30  ;;  %1462 = vrot.lane.b32.xlu1 %v2664_v26, %s2515_s24  ;;  %v736_v10 = vpop.permute.xlu2 %735  ;;  %v677_v35 = vstv %s2402_s9  ;;  %s3267_s24 = sld [smem:[#allocation2 + $0x100]] }
 0x268   : > { %v2942_v19 = vand.u32 4294901760, %v736_v10  ;;  %v678_v37 = vsub.f32 %v2985_v34, %v677_v35  ;;  %s2411_s9 = sld [smem:[#allocation4 + $0x181]] }
 0x26a   : > { %v2950_v21 = vsub.f32 %v736_v10, %v2942_v19  ;;  %v680_v10 = vstv %s2403_s12 }
 0x26e   : > { %1879 = vrot.lane.b32.xlu0 %v2668_v28, %s2516_s30 }
 0x26f   : > { %1887 = vrot.lane.b32.xlu2 %v2676_v32, %s2516_s30  ;;  %1895 = vrot.lane.b32.xlu1 %v2686_v36, %s2516_s30  ;;  %v724_v12 = vpop.permute.xlu2 %723  ;;  %v732_v16 = vpop.permute.xlu1 %731 }
 0x270   : > { %v2952_v22 = vand.u32 4294901760, %v732_v16 }
 0x272   : > { %v2977_v31 = vsub.f32 %v732_v16, %v2952_v22  ;;  %v2998_v16 = vand.u32 4294901760, %v724_v12 }
 0x274   : > { %v3025_v2 = vsub.f32 %v724_v12, %v2998_v16  ;;  %v4153_v0 = vand.u32 4294901760, %v2977_v31 }
 0x276   : > { %1873 = vrot.lane.b32.xlu0 %v2662_v25, %s2516_s30  ;;  %v2960_v25 = vand.u32 4294901760, %v730_v9 }
 0x277   : > { %1881 = vrot.lane.b32.xlu2 %v2670_v29, %s2516_s30  ;;  %1889 = vrot.lane.b32.xlu1 %v2678_v33, %s2516_s30  ;;  %v2932_v13 = vpop.permute.xlu2 %717  ;;  %v734_v14 = vpop.permute.xlu0 %733  ;;  %v3979_v33 = vand.u32 4294901760, %v2950_v21 }
 0x278   : > { %v2946_v20 = vand.u32 4294901760, %v734_v14  ;;  %v2988_v36 = vsub.f32 %v730_v9, %v2960_v25  ;;  %v681_v9 = vmul.f32 %v680_v10, %v678_v37  ;;  %v3028_v3 = vand.u32 4294901760, %v2932_v13 }
 0x279   : > { %v805_v18 = vsub.f32 %v2950_v21, %v3979_v33 }
 0x27a   : > { %v2970_v29 = vsub.f32 %v734_v14, %v2946_v20  ;;  %v682_v6 = vmul.f32 %v681_v9, %v678_v37 }
 0x27c   : > { %v4152_v5 = vand.u32 4294901760, %v2970_v29 }
 0x27e   : > { %v811_v33 = vsub.f32 %v2970_v29, %v4152_v5  ;;  %v817_v5 = vsub.f32 %v2977_v31, %v4153_v0  ;;  %v3049_v0 = vsub.f32 %v2932_v13, %v3028_v3 }
 0x27f   : > { %1875 = vrot.lane.b32.xlu2 %v2664_v26, %s2516_s30  ;;  %1883 = vrot.lane.b32.xlu1 %v2672_v30, %s2516_s30  ;;  %v2938_v15 = vpop.permute.xlu0 %721  ;;  %v2974_v30 = vand.u32 4294901760, %v728_v11 }
 0x280   : > { %v2940_v17 = vpop.permute.xlu2 %711  ;;  %v3013_v8 = vand.u32 4294901760, %v2938_v15 }
 0x281   : > { %v2996_v14 = vsub.f32 %v728_v11, %v2974_v30 }
 0x282   : > { %v3040_v12 = vsub.f32 %v2938_v15, %v3013_v8 }
 0x283   : > { %v3988_v11 = vand.u32 4294901760, %v2996_v14 }
 0x287   : > { %1877 = vrot.lane.b32.xlu1 %v2666_v27, %s2516_s30  ;;  %v2956_v24 = vpop.permute.xlu0 %715  ;;  %s2408_s30 = sld [smem:[#allocation2 + $0x180]] }
 0x288   : > { %v2962_v26 = vpop.permute.xlu2 %1484  ;;  %v738_v28 = vpop.permute.xlu1 %737  ;;  %v3053_v15 = vand.u32 4294901760, %v2956_v24 }
 0x289   : > { %v2972_v27 = vand.u32 4294901760, %v738_v28 }
 0x28b   : > { %v2980_v32 = vsub.f32 %v738_v28, %v2972_v27  ;;  %756 = vmatpush.msra.mxu2 %v2972_v27  ;;  %v670_v28 = vsub.f32 %v2985_v34, %v669_v40 }
 0x28d   : > { %758 = vmatpush.msra.mxu2 %v2942_v19  ;;  %v3976_v38 = vand.u32 4294901760, %v2980_v32  ;;  %v673_v10 = vmul.f32 %v672_v39, %v670_v28  ;;  %v684_v39 = vrot.slane %v682_v6, 1  ;;  %v812_v6 = vand.u32 4294901760, %v811_v33 }
 0x28f   : > { %760 = vmatpush.msra.mxu2 %v2946_v20  ;;  %v3002_v23 = vpop.permute.xlu0 %709  ;;  %v799_v35 = vsub.f32 %v2980_v32, %v3976_v38  ;;  %v674_v37 = vmul.f32 %v673_v10, %v670_v28  ;;  %v4154_v28 = vand.u32 4294901760, %v2988_v36 }
 0x290   : > { %v726_v40 = vpop.permute.xlu1 %725 }
 0x291   : > { %v3015_v7 = vpop.permute.xlu2 %1478  ;;  %v3017_v4 = vand.u32 4294901760, %v726_v40  ;;  %762 = vmatpush.msra.mxu2 %v2952_v22  ;;  %v800_v38 = vand.u32 4294901760, %v799_v35  ;;  %v806_v35 = vand.u32 4294901760, %v805_v18  ;;  %v686_v1 = vadd.f32 %v684_v39, %v674_v37 }
 0x292   : > { %v818_v37 = vand.u32 4294901760, %v817_v5  ;;  %v829_v39 = vsub.f32 %v2996_v14, %v3988_v11 }
 0x293   : > { %v3031_v9 = vsub.f32 %v726_v40, %v3017_v4  ;;  %764 = vmatpush.msra.mxu2 %v2960_v25  ;;  %801 = vmatpush.msra.mxu3 %v800_v38  ;;  %v823_v38 = vsub.f32 %v2988_v36, %v4154_v28  ;;  %v687_v10 = vmul.f32 1.442695, %v686_v1 }
 0x295   : > { %766 = vmatpush.msra.mxu2 %v2974_v30  ;;  %807 = vmatpush.msra.mxu3 %v806_v35  ;;  %v3991_v18 = vand.u32 4294901760, %v3031_v9  ;;  %2455 = vpow2.f32 %v687_v10  ;;  %v824_v1 = vand.u32 4294901760, %v823_v38  ;;  %v3074_v10 = vsub.f32 %v2956_v24, %v3053_v15 }
 0x296   : > { %v830_v38 = vand.u32 4294901760, %v829_v39 }
 0x297   : > { %768 = vmatpush.msra.mxu2 %v3017_v4  ;;  %813 = vmatpush.msra.mxu3 %v812_v6  ;;  %v1489_v33 = vpop.permute.xlu0 %1488  ;;  %v835_v5 = vsub.f32 %v3031_v9, %v3991_v18  ;;  %v4155_v6 = vand.u32 4294901760, %v3025_v2  ;;  %v4156_v18 = vand.u32 4294901760, %v3040_v12  ;;  %v4162_v52 = vand.u32 4294901760, %v3074_v10 }
 0x298   : > { %v720_v35 = vpop.permute.xlu1 %719 }
 0x299   : > { %v3060_v13 = vpop.permute.xlu2 %1472  ;;  %v3062_v40 = vand.u32 4294901760, %v720_v35  ;;  %770 = vmatpush.msra.mxu2 %v2998_v16  ;;  %819 = vmatpush.msra.mxu3 %v818_v37  ;;  %v841_v11 = vsub.f32 %v3025_v2, %v4155_v6  ;;  %v3083_v37 = vand.u32 4294901760, %v2940_v17  ;;  %v3086_v6 = vand.u32 4294901760, %v3002_v23 }
 0x29a   : > { %v847_v24 = vsub.f32 %v3040_v12, %v4156_v18  ;;  %v836_v39 = vand.u32 4294901760, %v835_v5  ;;  %v4159_v18 = vand.u32 4294901760, %v3049_v0 }
 0x29b   : > { %v3077_v28 = vsub.f32 %v720_v35, %v3062_v40  ;;  %772 = vmatpush.msra.mxu2 %v3013_v8  ;;  %825 = vmatpush.msra.mxu3 %v824_v1  ;;  %v3093_v35 = vand.u32 4294901760, %v1489_v33  ;;  %v2456_v58 = vpop.eup %2455  ;;  %v842_v61 = vand.u32 4294901760, %v841_v11  ;;  %v3115_v11 = vsub.f32 %v2940_v17, %v3083_v37 }
 0x29c   : > { %v859_v56 = vsub.f32 %v3049_v0, %v4159_v18  ;;  %v4160_v18 = vmov 0.0   ;;  %v848_v63 = vand.u32 4294901760, %v847_v24  ;;  %v654_v24 = vstv %s3080_s17 }
 0x29d   : > { %4157 = vst [vmem:[#allocation40_spill] sm:$0xff] %v3093_v35  ;;  %774 = vmatpush.msra.mxu2 %v3062_v40  ;;  %831 = vmatpush.msra.mxu3 %v830_v38  ;;  %v4006_v1 = vand.u32 4294901760, %v3077_v28  ;;  %v689_v38 = vperm.slane %v2456_v58, 0  ;;  %v3120_v54 = vsel %vm642_vm2, 1.0, %v4160_v18  ;;  %v4164_v51 = vand.u32 4294901760, %v3115_v11 }
 0x29e   : > { %4161 = vst [vmem:[#allocation41_spill] sm:$0xff] %v3120_v54 }
 0x29f   : > { %776 = vmatpush.msra.mxu2 %v3028_v3  ;;  %837 = vmatpush.msra.mxu3 %v836_v39  ;;  %v853_v62 = vsub.f32 %v3077_v28, %v4006_v1  ;;  %v3126_v39 = vsub.f32 %v3002_v23, %v3086_v6  ;;  %v3129_v1 = vsub.f32 %v1489_v33, %v3093_v35  ;;  %v860_v23 = vand.u32 4294901760, %v859_v56 }
 0x2a0   : > { %v3117_v59 = vpop.permute.xlu0 %1482  ;;  %v690_v17 = vmul.f32 %v689_v38, %v3120_v54  ;;  %v865_v33 = vsub.f32 %v3074_v10, %v4162_v52  ;;  %v646_v56 = vstv %s3091_s18 }
 0x2a1   : > { %v1491_v60 = vpop.permute.xlu2 %1490  ;;  %v714_v58 = vpop.permute.xlu1 %713  ;;  %778 = vmatpush.msra.mxu2 %v3053_v15  ;;  %843 = vmatpush.msra.mxu3 %v842_v61  ;;  %v854_v57 = vand.u32 4294901760, %v853_v62  ;;  %v4166_v45 = vand.u32 4294901760, %v3126_v39 }
 0x2a2   : > { %v3133_v18 = vand.u32 4294901760, %v1491_v60  ;;  %v3135_v5 = vand.u32 4294901760, %v714_v58  ;;  %v3140_v55 = vand.u32 4294901760, %v690_v17 }
 0x2a3   : > { %849 = vmatpush.msra.mxu3 %v848_v63 }
 0x2a4   : > { %4163 = vst [vmem:[#allocation42_spill] sm:$0xff] %v3140_v55  ;;  %v3143_v50 = vsub.f32 %v1491_v60, %v3133_v18  ;;  %v3146_v61 = vsub.f32 %v714_v58, %v3135_v5  ;;  %780 = vmatpush.msra.mxu2 %v3135_v5  ;;  %1509 = vmatpush.msra.mxu0 %v3133_v18 }
 0x2a5   : > { %855 = vmatpush.msra.mxu3 %v854_v57  ;;  %v3155_v38 = vsub.f32 %v690_v17, %v3140_v55  ;;  %v655_v60 = vsub.f32 %v2985_v34, %v654_v24  ;;  %v866_v57 = vand.u32 4294901760, %v865_v33  ;;  %v647_v17 = vsub.f32 %v2985_v34, %v646_v56 }
 0x2a6   : > { %v4023_v58 = vand.u32 4294901760, %v3143_v50  ;;  %782 = vmatpush.msra.mxu2 %v3083_v37  ;;  %1511 = vmatpush.msra.mxu0 %v3093_v35  ;;  %v4030_v63 = vand.u32 4294901760, %v3146_v61  ;;  %v649_v33 = vstv %s3122_s22  ;;  %v4165_v56 = vand.u32 4294901760, %v3129_v1 }
 0x2a7   : > { %861 = vmatpush.msra.mxu3 %v860_v23  ;;  %v4045_v52 = vand.u32 4294901760, %v3155_v38  ;;  %v658_v62 = vmul.f32 %v657_v53, %v655_v60  ;;  %v877_v23 = vsub.f32 %v3115_v11, %v4164_v51  ;;  %v650_v49 = vmul.f32 %v649_v33, %v647_v17 }
 0x2a8   : > { %v1552_v24 = vsub.f32 %v3143_v50, %v4023_v58  ;;  %784 = vmatpush.msra.mxu2 %v3086_v6  ;;  %v871_v48 = vsub.f32 %v3146_v61, %v4030_v63  ;;  %v1558_v53 = vsub.f32 %v3129_v1, %v4165_v56  ;;  %v1477_v63 = vpop.permute.xlu0 %1476  ;;  %v883_v51 = vsub.f32 %v3126_v39, %v4166_v45 }
 0x2a9   : > { %v708_v46 = vpop.permute.xlu1 %707  ;;  %867 = vmatpush.msra.mxu3 %v866_v57  ;;  %v790_v58 = vsub.f32 %v3155_v38, %v4045_v52  ;;  %v651_v57 = vmul.f32 %v650_v49, %v647_v17  ;;  %v659_v43 = vmul.f32 %v658_v62, %v655_v60  ;;  %v3189_v35 = vand.u32 4294901760, %v2962_v26 }
 0x2aa   : > { %v1553_v44 = vand.u32 4294901760, %v1552_v24  ;;  %v3183_v47 = vand.u32 4294901760, %v708_v46  ;;  %v872_v42 = vand.u32 4294901760, %v871_v48  ;;  %v878_v24 = vand.u32 4294901760, %v877_v23 }
 0x2ab   : > { %v791_v41 = vand.u32 4294901760, %v790_v58  ;;  %4167 = vst [vmem:[#allocation43_spill] sm:$0xff] %v3189_v35  ;;  %v3196_v33 = vand.u32 4294901760, %v3117_v59  ;;  %v1559_v45 = vand.u32 4294901760, %v1558_v53  ;;  %v661_v48 = vrot.slane %v659_v43, 1 }
 0x2ac   : > { %v3192_v56 = vsub.f32 %v708_v46, %v3183_v47  ;;  %786 = vmatpush.msra.mxu2 %v3183_v47  ;;  %873 = vmatpush.msra.mxu3 %v872_v42  ;;  %v884_v49 = vand.u32 4294901760, %v883_v51  ;;  %v3203_v42 = vsub.f32 %v2962_v26, %v3189_v35  ;;  %v3218_v23 = vand.u32 4294901760, %v3015_v7 }
 0x2ad   : > { %4168 = vst [vmem:[#allocation44_spill] sm:$0xff] %v3196_v33  ;;  %1554 = vmatpush.msra.mxu1 %v1553_v44  ;;  %792 = vmatmul.f32.vlgmr.msra.gmra.mxu2 %v791_v41  ;;  %v663_v46 = vadd.f32 %v661_v48, %v651_v57  ;;  %v3210_v43 = vsub.f32 %v3117_v59, %v3196_v33  ;;  %v3229_v57 = vand.u32 4294901760, %v1477_v63 }
 0x2ae   : > { %899 = vmatpush.msrb.mxu2 %v2980_v32  ;;  %879 = vmatpush.msra.mxu3 %v878_v24  ;;  %v4041_v62 = vand.u32 4294901760, %v3192_v56  ;;  %v4042_v26 = vand.u32 4294901760, %v3203_v42  ;;  %4170 = vst [vmem:[#allocation46_spill] sm:$0xff] %v3218_v23 }
 0x2af   : > { %1560 = vmatpush.msra.mxu1 %v1559_v45  ;;  %v664_v41 = vmul.f32 1.442695, %v663_v46  ;;  %v4044_v51 = vand.u32 4294901760, %v3210_v43  ;;  %4171 = vst [vmem:[#allocation47_spill] sm:$0xff] %v3229_v57  ;;  %v3238_v45 = vsub.f32 %v3015_v7, %v3218_v23 }
 0x2b0   : > { %902 = vmatpush.msrb.mxu2 %v2950_v21  ;;  %885 = vmatpush.msra.mxu3 %v884_v49  ;;  %v889_v44 = vsub.f32 %v3192_v56, %v4041_v62  ;;  %v3223_v59 = vpop.permute.xlu0 %1470  ;;  %v1570_v49 = vsub.f32 %v3203_v42, %v4042_v26 }
 0x2b1   : > { %v1487_v60 = vpop.permute.xlu1 %1486  ;;  %2457 = vpow2.f32 %v664_v41  ;;  %4172 = vst [vmem:[#allocation48_spill] sm:$0xff] %v3238_v45  ;;  %v1576_v7 = vsub.f32 %v3210_v43, %v4044_v51  ;;  %v4053_v26 = vand.u32 4294901760, %v3238_v45 }
 0x2b2   : > { %905 = vmatpush.msrb.mxu2 %v2970_v29  ;;  %v3213_v58 = vand.u32 4294901760, %v1487_v60  ;;  %v890_v17 = vand.u32 4294901760, %v889_v44  ;;  %v1571_v51 = vand.u32 4294901760, %v1570_v49 }
 0x2b4   : > { %4169 = vst [vmem:[#allocation45_spill] sm:$0xff] %v3213_v58  ;;  %908 = vmatpush.msrb.mxu2 %v2977_v31  ;;  %v3221_v53 = vsub.f32 %v1487_v60, %v3213_v58  ;;  %891 = vmatpush.msra.mxu3 %v890_v17  ;;  %v3255_v60 = vsub.f32 %v1477_v63, %v3229_v57 }
 0x2b5   : > { %1513 = vmatpush.msra.mxu0 %v3213_v58  ;;  %893 = vmatmul.f32.vlgmr.msra.gmra.mxu3 %v3140_v55 }
 0x2b6   : > { %911 = vmatpush.msrb.mxu2 %v2988_v36  ;;  %952 = vmatpush.msrb.mxu3 %v2972_v27  ;;  %v4043_v24 = vand.u32 4294901760, %v3221_v53  ;;  %4173 = vst [vmem:[#allocation49_spill] sm:$0xff] %v3255_v60 }
 0x2b7   : > { %1515 = vmatpush.msra.mxu0 %v3189_v35  ;;  %v2458_v46 = vpop.eup %2457  ;;  %v1438_v35 = vstv %s3267_s24 }
 0x2b8   : > { %914 = vmatpush.msrb.mxu2 %v2996_v14  ;;  %954 = vmatpush.msrb.mxu3 %v2942_v19  ;;  %v1564_v48 = vsub.f32 %v3221_v53, %v4043_v24  ;;  %v666_v62 = vperm.slane %v2458_v46, 0  ;;  %v1467_v52 = vpop.permute.xlu0 %1466 }
 0x2b9   : > { %1517 = vmatpush.msra.mxu0 %v3196_v33  ;;  %v1481_v44 = vpop.permute.xlu1 %1480  ;;  %v3321_v58 = vand.u32 4294901760, %v1467_v52 }
 0x2ba   : > { %917 = vmatpush.msrb.mxu2 %v3031_v9  ;;  %956 = vmatpush.msrb.mxu3 %v2946_v20  ;;  %v3257_v41 = vand.u32 4294901760, %v1481_v44  ;;  %v1565_v17 = vand.u32 4294901760, %v1564_v48  ;;  %v667_v63 = vmul.f32 %v666_v62, %v3120_v54  ;;  %v3270_v48 = vand.u32 4294901760, %v3060_v13 }
 0x2bb   : > { %v1577_v62 = vand.u32 4294901760, %v1576_v7  ;;  %4184 = vst [vmem:[#allocation59_spill] sm:$0xff] %v3321_v58 }
 0x2bc   : > { %4174 = vst [vmem:[#allocation50_spill] sm:$0xff] %v3257_v41  ;;  %920 = vmatpush.msrb.mxu2 %v3025_v2  ;;  %958 = vmatpush.msrb.mxu3 %v2952_v22  ;;  %v3263_v24 = vsub.f32 %v1481_v44, %v3257_v41  ;;  %v3279_v49 = vand.u32 4294901760, %v667_v63 }
 0x2bd   : > { %1519 = vmatpush.msra.mxu0 %v3257_v41  ;;  %1566 = vmatpush.msra.mxu1 %v1565_v17  ;;  %4176 = vst [vmem:[#allocation52_spill] sm:$0xff] %v3270_v48  ;;  %v3282_v17 = vand.u32 4294901760, %v3223_v59 }
 0x2be   : > { %4175 = vst [vmem:[#allocation51_spill] sm:$0xff] %v3263_v24  ;;  %923 = vmatpush.msrb.mxu2 %v3040_v12  ;;  %960 = vmatpush.msrb.mxu3 %v2960_v25  ;;  %v4050_v44 = vand.u32 4294901760, %v3263_v24  ;;  %v1129_v7 = vsub.f32 %v667_v63, %v3279_v49 }
 0x2bf   : > { %1521 = vmatpush.msra.mxu0 %v3218_v23  ;;  %1572 = vmatpush.msra.mxu1 %v1571_v51  ;;  %4177 = vst [vmem:[#allocation53_spill] sm:$0xff] %v3279_v49  ;;  %v1588_v51 = vsub.f32 %v3238_v45, %v4053_v26  ;;  %v3296_v23 = vsub.f32 %v3060_v13, %v3270_v48  ;;  %v4181_v26 = vand.u32 4294901760, %v3255_v60  ;;  %v1465_v49 = vpop.permute.xlu2 %1464 }
 0x2c0   : > { %4178 = vst [vmem:[#allocation54_spill] sm:$0xff] %v3282_v17  ;;  %926 = vmatpush.msrb.mxu2 %v3077_v28  ;;  %962 = vmatpush.msrb.mxu3 %v2974_v30  ;;  %v1582_v46 = vsub.f32 %v3263_v24, %v4050_v44  ;;  %v3310_v13 = vsub.f32 %v3223_v59, %v3282_v17  ;;  %v1449_v59 = vstv %s3274_s25 }
 0x2c1   : > { %1523 = vmatpush.msra.mxu0 %v3229_v57  ;;  %1578 = vmatpush.msra.mxu1 %v1577_v62  ;;  %4179 = vst [vmem:[#allocation55_spill] sm:$0xff] %v3296_v23  ;;  %v1475_v41 = vpop.permute.xlu1 %1474  ;;  %v1446_v62 = vstv %s3252_s23  ;;  %v1594_v63 = vsub.f32 %v3255_v60, %v4181_v26  ;;  %v1439_v60 = vsub.f32 %v2985_v34, %v1438_v35 }
 0x2c2   : > { %929 = vmatpush.msrb.mxu2 %v3049_v0  ;;  %964 = vmatpush.msrb.mxu3 %v3017_v4  ;;  %v3303_v44 = vand.u32 4294901760, %v1475_v41  ;;  %v1583_v57 = vand.u32 4294901760, %v1582_v46  ;;  %4182 = vst [vmem:[#allocation57_spill] sm:$0xff] %v3310_v13  ;;  %v1589_v46 = vand.u32 4294901760, %v1588_v51  ;;  %v1447_v26 = vsub.f32 %v2985_v34, %v1446_v62 }
 0x2c3   : > { %1288 = vmatmul.f32.vlgmr.msrb.gmra.mxu0 %v1129_v7  ;;  %v3328_v51 = vand.u32 4294901760, %v1465_v49  ;;  %v3343_v62 = vsub.f32 %v1467_v52, %v3321_v58  ;;  %v4189_v34 = vand.u32 4294901760, %v3296_v23  ;;  %v4192_v52 = vand.u32 4294901760, %v3310_v13 }
 0x2c4   : > { %4180 = vst [vmem:[#allocation56_spill] sm:$0xff] %v3303_v44  ;;  %932 = vmatpush.msrb.mxu2 %v3074_v10  ;;  %966 = vmatpush.msrb.mxu3 %v2998_v16  ;;  %v3315_v33 = vsub.f32 %v1475_v41, %v3303_v44  ;;  %v1595_v41 = vand.u32 4294901760, %v1594_v63 }
 0x2c5   : > { %1525 = vmatpush.msra.mxu0 %v3303_v44  ;;  %1584 = vmatpush.msra.mxu1 %v1583_v57  ;;  %v1130_v57 = vand.u32 4294901760, %v1129_v7  ;;  %4185 = vst [vmem:[#allocation60_spill] sm:$0xff] %v3328_v51  ;;  %v3334_v44 = vpop.permute.xlu0 %1899  ;;  %v1606_v35 = vsub.f32 %v3296_v23, %v4189_v34  ;;  %v4194_v34 = vand.u32 4294901760, %v2980_v32 }
 0x2c6   : > { %4183 = vst [vmem:[#allocation58_spill] sm:$0xff] %v3315_v33  ;;  %935 = vmatpush.msrb.mxu2 %v3146_v61  ;;  %968 = vmatpush.msrb.mxu3 %v3013_v8  ;;  %v4075_v45 = vand.u32 4294901760, %v3315_v33 }
 0x2c7   : > { %1527 = vmatpush.msra.mxu0 %v3270_v48  ;;  %1590 = vmatpush.msra.mxu1 %v1589_v46  ;;  %4186 = vst [vmem:[#allocation61_spill] sm:$0xff] %v3334_v44  ;;  %v3340_v46 = vsub.f32 %v1129_v7, %v1130_v57  ;;  %v1450_v48 = vmul.f32 %v1449_v59, %v1447_v26 }
 0x2c8   : > { %938 = vmatpush.msrb.mxu2 %v3115_v11  ;;  %970 = vmatpush.msrb.mxu3 %v3062_v40  ;;  %v1600_v63 = vsub.f32 %v3315_v33, %v4075_v45  ;;  %4188 = vst [vmem:[#allocation63_spill] sm:$0xff] %v3343_v62  ;;  %v3354_v7 = vsub.f32 %v1465_v49, %v3328_v51  ;;  %v1623_v49 = vand.u32 4294901760, %v3343_v62 }
 0x2c9   : > { %1529 = vmatpush.msra.mxu0 %v3282_v17  ;;  %1596 = vmatpush.msra.mxu1 %v1595_v41  ;;  %4187 = vst [vmem:[#allocation62_spill] sm:$0xff] %v3340_v46  ;;  %v1469_v55 = vpop.permute.xlu1 %1468  ;;  %v1441_v41 = vstv %s3300_s26  ;;  %v1612_v59 = vsub.f32 %v3310_v13, %v4192_v52  ;;  %v1607_v46 = vand.u32 4294901760, %v1606_v35  ;;  %v4195_v52 = vand.u32 4294901760, %v2950_v21 }
 0x2ca   : > { %941 = vmatpush.msrb.mxu2 %v3126_v39  ;;  %972 = vmatpush.msrb.mxu3 %v3028_v3  ;;  %v3351_v44 = vand.u32 4294901760, %v1469_v55  ;;  %v1601_v17 = vand.u32 4294901760, %v1600_v63  ;;  %4191 = vst [vmem:[#allocation65_spill] sm:$0xff] %v3354_v7  ;;  %v1451_v63 = vmul.f32 %v1450_v48, %v1447_v26  ;;  %v4196_v48 = vand.u32 4294901760, %v2970_v29 }
 0x2cb   : > { %1327 = vmatmul.f32.vlgmr.msrb.gmra.mxu1 %v1130_v57  ;;  %v1442_v57 = vmul.f32 %v1441_v41, %v1439_v60  ;;  %v1613_v32 = vand.u32 4294901760, %v1612_v59  ;;  %v4197_v29 = vand.u32 4294901760, %v2977_v31  ;;  %v4200_v31 = vand.u32 4294901760, %v3155_v38 }
 0x2cc   : > { %4190 = vst [vmem:[#allocation64_spill] sm:$0xff] %v3351_v44  ;;  %944 = vmatpush.msrb.mxu2 %v3192_v56  ;;  %974 = vmatpush.msrb.mxu3 %v3053_v15  ;;  %v3362_v45 = vsub.f32 %v1469_v55, %v3351_v44  ;;  %v4085_v55 = vand.u32 4294901760, %v3354_v7  ;;  %v1453_v21 = vrot.slane %v1451_v63, 1 }
 0x2cd   : > { %1531 = vmatpush.msra.mxu0 %v3351_v44  ;;  %1602 = vmatpush.msra.mxu1 %v1601_v17  ;;  %v1443_v26 = vmul.f32 %v1442_v57, %v1439_v60  ;;  %v1461_v41 = vpop.permute.xlu0 %1460 }
 0x2ce   : > { %4193 = vst [vmem:[#allocation66_spill] sm:$0xff] %v3362_v45  ;;  %993 = vmatpush.msra.mxu2 %v4194_v34  ;;  %976 = vmatpush.msrb.mxu3 %v3135_v5  ;;  %v1617_v23 = vand.u32 4294901760, %v3362_v45  ;;  %v1630_v60 = vsub.f32 %v3354_v7, %v4085_v55  ;;  %v4198_v34 = vand.u32 4294901760, %v2988_v36  ;;  %v3397_v63 = vand.u32 4294901760, %v1461_v41 }
 0x2cf   : > { %1533 = vmatpush.msra.mxu0 %v3321_v58  ;;  %1608 = vmatpush.msra.mxu1 %v1607_v46  ;;  %v1624_v46 = vsub.f32 %v3343_v62, %v1623_v49  ;;  %v1455_v57 = vadd.f32 %v1453_v21, %v1443_v26  ;;  %v4202_v36 = vand.u32 4294901760, %v3031_v9  ;;  %v4207_v9 = vand.u32 4294901760, %v3040_v12 }
 0x2d0   : > { %997 = vmatpush.msra.mxu2 %v4195_v52  ;;  %978 = vmatpush.msrb.mxu3 %v3083_v37  ;;  %v1618_v17 = vsub.f32 %v3362_v45, %v1617_v23  ;;  %4199 = vst [vmem:[#allocation67_spill] sm:$0xff] %v3397_v63  ;;  %v4210_v12 = vand.u32 4294901760, %v3049_v0  ;;  %v3444_v0 = vpop.permute.xlu2 %1897 }
 0x2d1   : > { %1535 = vmatpush.msra.mxu0 %v3328_v51  ;;  %1614 = vmatpush.msra.mxu1 %v1613_v32  ;;  %v3381_v35 = vpop.permute.xlu1 %1901  ;;  %v1625_v52 = vand.u32 4294901760, %v1624_v46  ;;  %v4201_v32 = vand.u32 4294901760, %v2996_v14  ;;  %v4205_v14 = vand.u32 4294901760, %v3025_v2  ;;  %v4208_v2 = vand.u32 4294901760, %v3077_v28 }
 0x2d2   : > { %1001 = vmatpush.msra.mxu2 %v4196_v48  ;;  %980 = vmatpush.msrb.mxu3 %v3086_v6  ;;  %v1619_v59 = vand.u32 4294901760, %v1618_v17  ;;  %v1631_v48 = vand.u32 4294901760, %v1630_v60  ;;  %v3408_v17 = vsub.f32 %v1461_v41, %v3397_v63  ;;  %v4212_v41 = vand.u32 4294901760, %v3074_v10 }
 0x2d3   : > { %947 = vmatmul.f32.vlgmr.msrb.gmra.mxu2 %v3155_v38  ;;  %v4216_v10 = vand.u32 4294901760, %v3115_v11  ;;  %v4220_v11 = vld [vmem:[#allocation40_spill] sm:$0xff] }
 0x2d4   : > { %1005 = vmatpush.msra.mxu2 %v4197_v29  ;;  %982 = vmatpush.msrb.mxu3 %v3183_v47  ;;  %4203 = vst [vmem:[#allocation68_spill] sm:$0xff] %v3408_v17 }
 0x2d5   : > { %1620 = vmatpush.msra.mxu1 %v1619_v59  ;;  %986 = vmatmul.f32.vlgmr.msrb.gmra.mxu3 %v4200_v31  ;;  %v4213_v59 = vand.u32 4294901760, %v3221_v53  ;;  %v4219_v31 = vand.u32 4294901760, %v3263_v24 }
 0x2d6   : > { %1009 = vmatpush.msra.mxu2 %v4198_v34  ;;  %1060 = vmatpush.msra.mxu3 %v2972_v27  ;;  %v1456_v27 = vmul.f32 1.442695, %v1455_v57  ;;  %v4215_v57 = vand.u32 4294901760, %v3203_v42 }
 0x2d7   : > { %1626 = vmatpush.msra.mxu1 %v1625_v52  ;;  %v4222_v52 = vld [vmem:[#allocation10_spill] sm:$0xff] }
 0x2d8   : > { %1013 = vmatpush.msra.mxu2 %v4201_v32  ;;  %1062 = vmatpush.msra.mxu3 %v2942_v19  ;;  %2459 = vpow2.f32 %v1456_v27  ;;  %v4080_v32 = vand.u32 4294901760, %v4222_v52  ;;  %v4227_v27 = vld [vmem:[#allocation45_spill] sm:$0xff] }
 0x2d9   : > { %1632 = vmatpush.msra.mxu1 %v1631_v48  ;;  %v1463_v38 = vpop.permute.xlu1 %1462  ;;  %v4223_v48 = vld [vmem:[#allocation42_spill] sm:$0xff] }
 0x2da   : > { %1017 = vmatpush.msra.mxu2 %v4202_v36  ;;  %1064 = vmatpush.msra.mxu3 %v2946_v20  ;;  %v3410_v26 = vand.u32 4294901760, %v1463_v38  ;;  %v4081_v20 = vand.u32 4294901760, %v3408_v17 }
 0x2dc   : > { %4204 = vst [vmem:[#allocation69_spill] sm:$0xff] %v3410_v26  ;;  %1021 = vmatpush.msra.mxu2 %v4205_v14  ;;  %1066 = vmatpush.msra.mxu3 %v2952_v22  ;;  %v3416_v19 = vsub.f32 %v1463_v38, %v3410_v26  ;;  %v4209_v22 = vand.u32 4294901760, %v3143_v50  ;;  %v1642_v28 = vsub.f32 %v3408_v17, %v4081_v20  ;;  %v3477_v14 = vpop.permute.xlu2 %1903  ;;  %v4253_v20 = vld [vmem:[#allocation24_spill] sm:$0xff] }
 0x2dd   : > { %1537 = vmatpush.msra.mxu0 %v3410_v26  ;;  %v3550_v62 = vand.u32 4294901760, %v3477_v14 }
 0x2de   : > { %4206 = vst [vmem:[#allocation70_spill] sm:$0xff] %v3416_v19  ;;  %1025 = vmatpush.msra.mxu2 %v4207_v9  ;;  %1068 = vmatpush.msra.mxu3 %v2960_v25  ;;  %v4083_v21 = vand.u32 4294901760, %v3416_v19  ;;  %v2460_v46 = vpop.eup %2459  ;;  %v1643_v60 = vand.u32 4294901760, %v1642_v28  ;;  %v1140_v28 = vsub.f32 %v4222_v52, %v4080_v32  ;;  %v4250_v32 = vld [vmem:[#allocation22_spill] sm:$0xff]  ;;  %v4261_v55 = vand.u32 4294901760, %v3416_v19 }
 0x2df   : > { %1539 = vmatpush.msra.mxu0 %v3397_v63  ;;  %v1458_v34 = vperm.slane %v2460_v46, 0  ;;  %v4234_v46 = vld [vmem:[#allocation14_spill] sm:$0xff]  ;;  %4256 = vst [vmem:[#allocation42_spill] sm:$0xff] %v3550_v62 }
 0x2e0   : > { %1029 = vmatpush.msra.mxu2 %v4208_v2  ;;  %1070 = vmatpush.msra.mxu3 %v2974_v30  ;;  %v1636_v25 = vsub.f32 %v3416_v19, %v4083_v21  ;;  %v4211_v30 = vand.u32 4294901760, %v3129_v1  ;;  %v3539_v21 = vpop.permute.xlu0 %1891  ;;  %v4275_v19 = vld [vmem:[#allocation29_spill] sm:$0xff] }
 0x2e1   : > { %1746 = vmatpush.msrb.mxu0 %v4209_v22  ;;  %v4231_v22 = vld [vmem:[#allocation9_spill] sm:$0xff] }
 0x2e2   : > { %1033 = vmatpush.msra.mxu2 %v4210_v12  ;;  %1072 = vmatpush.msra.mxu3 %v3017_v4  ;;  %v1637_v29 = vand.u32 4294901760, %v1636_v25  ;;  %v4214_v4 = vand.u32 4294901760, %v3146_v61  ;;  %v4218_v61 = vand.u32 4294901760, %v3126_v39  ;;  %v4224_v39 = vld [vmem:[#allocation48_spill] sm:$0xff]  ;;  %v4232_v12 = vld [vmem:[#allocation43_spill] sm:$0xff]  ;;  %v4233_v25 = vand.u32 4294901760, %v3315_v33 }
 0x2e3   : > { %1750 = vmatpush.msrb.mxu0 %v4211_v30  ;;  %v4225_v36 = vand.u32 4294901760, %v4224_v39  ;;  %v4235_v30 = vld [vmem:[#allocation11_spill] sm:$0xff] }
 0x2e4   : > { %1037 = vmatpush.msra.mxu2 %v4212_v41  ;;  %1074 = vmatpush.msra.mxu3 %v2998_v16  ;;  %v4217_v16 = vand.u32 4294901760, %v3210_v43  ;;  %v4236_v41 = vld [vmem:[#allocation44_spill] sm:$0xff] }
 0x2e5   : > { %1754 = vmatpush.msrb.mxu0 %v4213_v59  ;;  %1638 = vmatpush.msra.mxu1 %v1637_v29  ;;  %v4238_v59 = vld [vmem:[#allocation55_spill] sm:$0xff] }
 0x2e6   : > { %1041 = vmatpush.msra.mxu2 %v4214_v4  ;;  %1076 = vmatpush.msra.mxu3 %v3013_v8  ;;  %v1459_v8 = vmul.f32 %v1458_v34, %v3120_v54  ;;  %v4254_v54 = vld [vmem:[#allocation21_spill] sm:$0xff] }
 0x2e7   : > { %1758 = vmatpush.msrb.mxu0 %v4215_v57  ;;  %1644 = vmatpush.msra.mxu1 %v1643_v60  ;;  %v4240_v60 = vld [vmem:[#allocation16_spill] sm:$0xff]  ;;  %v4241_v57 = vld [vmem:[#allocation13_spill] sm:$0xff] }
 0x2e8   : > { %1045 = vmatpush.msra.mxu2 %v4216_v10  ;;  %1078 = vmatpush.msra.mxu3 %v3062_v40  ;;  %v4221_v40 = vand.u32 4294901760, %v3192_v56  ;;  %v3475_v38 = vand.u32 4294901760, %v1459_v8  ;;  %v4228_v56 = vld [vmem:[#allocation49_spill] sm:$0xff]  ;;  %v4082_v34 = vand.u32 4294901760, %v4240_v60  ;;  %v4242_v10 = vld [vmem:[#allocation50_spill] sm:$0xff] }
 0x2e9   : > { %1762 = vmatpush.msrb.mxu0 %v4217_v16  ;;  %1813 = vmatpush.msrb.mxu1 %v3133_v18  ;;  %v4229_v9 = vand.u32 4294901760, %v4228_v56  ;;  %v1141_v16 = vand.u32 4294901760, %v1140_v28 }
 0x2ea   : > { %1049 = vmatpush.msra.mxu2 %v4218_v61  ;;  %1080 = vmatpush.msra.mxu3 %v3028_v3  ;;  %v4226_v3 = vld [vmem:[#allocation8_spill] sm:$0xff]  ;;  %v3495_v29 = vsub.f32 %v1459_v8, %v3475_v38  ;;  %v4243_v61 = vand.u32 4294901760, %v3310_v13  ;;  %v4244_v8 = vld [vmem:[#allocation18_spill] sm:$0xff]  ;;  %v1158_v28 = vsub.f32 %v4240_v60, %v4082_v34  ;;  %v4251_v34 = vld [vmem:[#allocation19_spill] sm:$0xff]  ;;  %v4267_v13 = vand.u32 4294901760, %v3408_v17 }
 0x2eb   : > { %1766 = vmatpush.msrb.mxu0 %v4219_v31  ;;  %1815 = vmatpush.msrb.mxu1 %v4220_v11  ;;  %v4084_v31 = vand.u32 4294901760, %v4244_v8  ;;  %v4271_v17 = vld [vmem:[#allocation27_spill] sm:$0xff] }
 0x2ec   : > { %1053 = vmatpush.msra.mxu2 %v4221_v40  ;;  %1082 = vmatpush.msra.mxu3 %v3053_v15  ;;  %v4230_v15 = vld [vmem:[#allocation12_spill] sm:$0xff]  ;;  %4237 = vst [vmem:[#allocation10_spill] sm:$0xff] %v3495_v29  ;;  %v4245_v40 = vld [vmem:[#allocation15_spill] sm:$0xff] }
 0x2ed   : > { %1055 = vmatmul.f32.vlgmr.msra.gmra.mxu2 %v4223_v48  ;;  %1770 = vmatpush.msrb.mxu0 %v4225_v36  ;;  %v4079_v2 = vand.u32 4294901760, %v4230_v15  ;;  %v4088_v36 = vand.u32 4294901760, %v3495_v29  ;;  %v4293_v11 = vld [vmem:[#allocation39_spill] sm:$0xff] }
 0x2ee   : > { %1097 = vmatpush.msrb.mxu2 %v4226_v3  ;;  %1817 = vmatpush.msrb.mxu1 %v4227_v27  ;;  %v4289_v27 = vld [vmem:[#allocation62_spill] sm:$0xff] }
 0x2ef   : > { %1084 = vmatpush.msra.mxu3 %v3135_v5  ;;  %1774 = vmatpush.msrb.mxu0 %v4229_v9  ;;  %v4078_v5 = vand.u32 4294901760, %v4234_v46  ;;  %v1146_v4 = vsub.f32 %v4230_v15, %v4079_v2  ;;  %v3516_v9 = vpop.permute.xlu1 %1895  ;;  %v4249_v2 = vld [vmem:[#allocation47_spill] sm:$0xff]  ;;  %v1132_v39 = vand.u32 4294901760, %v4289_v27 }
 0x2f0   : > { %1099 = vmatpush.msrb.mxu2 %v4231_v22  ;;  %1819 = vmatpush.msrb.mxu1 %v4232_v12  ;;  %v3607_v33 = vand.u32 4294901760, %v3516_v9 }
 0x2f1   : > { %1086 = vmatpush.msra.mxu3 %v3083_v37  ;;  %1778 = vmatpush.msrb.mxu0 %v4233_v25  ;;  %v4239_v37 = vand.u32 4294901760, %v4238_v59  ;;  %v1147_v25 = vand.u32 4294901760, %v1146_v4  ;;  %v1164_v4 = vsub.f32 %v4244_v8, %v4084_v31 }
 0x2f2   : > { %1101 = vmatpush.msrb.mxu2 %v4235_v30  ;;  %1821 = vmatpush.msrb.mxu1 %v4236_v41  ;;  %v3634_v12 = vsub.f32 %v3516_v9, %v3607_v33 }
 0x2f3   : > { %1088 = vmatpush.msra.mxu3 %v3086_v6  ;;  %1782 = vmatpush.msrb.mxu0 %v4239_v37  ;;  %v1152_v6 = vsub.f32 %v4234_v46, %v4078_v5  ;;  %v4247_v37 = vld [vmem:[#allocation20_spill] sm:$0xff]  ;;  %v4248_v5 = vld [vmem:[#allocation17_spill] sm:$0xff] }
 0x2f4   : > { %1103 = vmatpush.msrb.mxu2 %v4241_v57  ;;  %1823 = vmatpush.msrb.mxu1 %v4242_v10  ;;  %4284 = vst [vmem:[#allocation16_spill] sm:$0xff] %v3634_v12 }
 0x2f5   : > { %1090 = vmatpush.msra.mxu3 %v3183_v47  ;;  %1786 = vmatpush.msrb.mxu0 %v4243_v61  ;;  %v4246_v47 = vld [vmem:[#allocation46_spill] sm:$0xff]  ;;  %v4091_v61 = vand.u32 4294901760, %v4247_v37 }
 0x2f6   : > { %1092 = vmatmul.f32.vlgmr.msra.gmra.mxu3 %v4223_v48  ;;  %1105 = vmatpush.msrb.mxu2 %v4245_v40  ;;  %v3526_v48 = vpop.permute.xlu2 %1893 }
 0x2f7   : > { %1142 = vmatpush.msrb.mxu3 %v1141_v16  ;;  %1825 = vmatpush.msrb.mxu1 %v4246_v47  ;;  %v1153_v16 = vand.u32 4294901760, %v1152_v6  ;;  %v1159_v6 = vand.u32 4294901760, %v1158_v28  ;;  %v1170_v31 = vsub.f32 %v4247_v37, %v4091_v61  ;;  %v4258_v28 = vand.u32 4294901760, %v4250_v32  ;;  %v4266_v61 = vld [vmem:[#allocation25_spill] sm:$0xff] }
 0x2f8   : > { %1107 = vmatpush.msrb.mxu2 %v4248_v5  ;;  %1790 = vmatpush.msrb.mxu0 %v1617_v23  ;;  %v1543_v23 = vsub.f32 %v3495_v29, %v4088_v36  ;;  %v4257_v36 = vld [vmem:[#allocation52_spill] sm:$0xff] }
 0x2f9   : > { %1148 = vmatpush.msrb.mxu3 %v1147_v25  ;;  %1827 = vmatpush.msrb.mxu1 %v4249_v2  ;;  %v4252_v25 = vld [vmem:[#allocation56_spill] sm:$0xff]  ;;  %v1176_v29 = vsub.f32 %v4250_v32, %v4258_v28  ;;  %v4260_v2 = vld [vmem:[#allocation23_spill] sm:$0xff] }
 0x2fa   : > { %1109 = vmatpush.msrb.mxu2 %v4251_v34  ;;  %1794 = vmatpush.msrb.mxu0 %v1623_v49  ;;  %v4255_v49 = vand.u32 4294901760, %v3354_v7  ;;  %v1544_v7 = vand.u32 4294901760, %v1543_v23  ;;  %v4265_v28 = vld [vmem:[#allocation28_spill] sm:$0xff]  ;;  %v4269_v23 = vld [vmem:[#allocation61_spill] sm:$0xff] }
 0x2fb   : > { %1154 = vmatpush.msrb.mxu3 %v1153_v16  ;;  %1829 = vmatpush.msrb.mxu1 %v4252_v25  ;;  %v1165_v16 = vand.u32 4294901760, %v1164_v4  ;;  %v4259_v25 = vld [vmem:[#allocation26_spill] sm:$0xff]  ;;  %v4264_v4 = vand.u32 4294901760, %v4253_v20 }
 0x2fc   : > { %1111 = vmatpush.msrb.mxu2 %v4254_v54  ;;  %1798 = vmatpush.msrb.mxu0 %v4255_v49  ;;  %v3561_v49 = vand.u32 4294901760, %v3381_v35 }
 0x2fd   : > { %1160 = vmatpush.msrb.mxu3 %v1159_v6  ;;  %1831 = vmatpush.msrb.mxu1 %v4257_v36  ;;  %v4263_v6 = vld [vmem:[#allocation54_spill] sm:$0xff]  ;;  %v1171_v36 = vand.u32 4294901760, %v1170_v31  ;;  %v1182_v45 = vsub.f32 %v4253_v20, %v4264_v4  ;;  %v1177_v31 = vand.u32 4294901760, %v1176_v29  ;;  %v4270_v4 = vand.u32 4294901760, %v4259_v25 }
 0x2fe   : > { %1113 = vmatpush.msrb.mxu2 %v4260_v2  ;;  %1802 = vmatpush.msrb.mxu0 %v4261_v55  ;;  %4262 = vst [vmem:[#allocation8_spill] sm:$0xff] %v3561_v49  ;;  %v3573_v55 = vsub.f32 %v3477_v14, %v3550_v62  ;;  %v3587_v14 = vand.u32 4294901760, %v3444_v0  ;;  %v3589_v10 = vpop.permute.xlu2 %1887 }
 0x2ff   : > { %1166 = vmatpush.msrb.mxu3 %v1165_v16  ;;  %1833 = vmatpush.msrb.mxu1 %v4263_v6  ;;  %v3576_v16 = vand.u32 4294901760, %v4269_v23  ;;  %v3578_v6 = vpop.permute.xlu1 %1889  ;;  %v1188_v47 = vsub.f32 %v4259_v25, %v4270_v4  ;;  %v1183_v29 = vand.u32 4294901760, %v1182_v45  ;;  %v4274_v4 = vand.u32 4294901760, %v4265_v28 }
 0x300   : > { %1115 = vmatpush.msrb.mxu2 %v4266_v61  ;;  %1806 = vmatpush.msrb.mxu0 %v4267_v13  ;;  %4268 = vst [vmem:[#allocation12_spill] sm:$0xff] %v3573_v55  ;;  %v4272_v13 = vld [vmem:[#allocation30_spill] sm:$0xff]  ;;  %v3647_v9 = vand.u32 4294901760, %v3578_v6 }
 0x301   : > { %1172 = vmatpush.msrb.mxu3 %v1171_v36  ;;  %1835 = vmatpush.msrb.mxu1 %v3351_v44  ;;  %v3593_v36 = vsub.f32 %v3381_v35, %v3561_v49  ;;  %v4276_v44 = vld [vmem:[#allocation32_spill] sm:$0xff]  ;;  %v3604_v41 = vsub.f32 %v4269_v23, %v3576_v16  ;;  %v1886_v35 = vpop.permute.xlu0 %1885  ;;  %v1189_v45 = vand.u32 4294901760, %v1188_v47  ;;  %v3617_v23 = vsub.f32 %v3444_v0, %v3587_v14  ;;  %v4281_v47 = vld [vmem:[#allocation34_spill] sm:$0xff] }
 0x302   : > { %1545 = vmatmul.f32.vlgmr.msra.gmra.mxu0 %v1544_v7  ;;  %1117 = vmatpush.msrb.mxu2 %v4271_v17  ;;  %v1194_v7 = vsub.f32 %v4265_v28, %v4274_v4  ;;  %v4279_v4 = vand.u32 4294901760, %v4272_v13  ;;  %v3630_v0 = vand.u32 4294901760, %v3539_v21 }
 0x303   : > { %4273 = vst [vmem:[#allocation9_spill] sm:$0xff] %v3593_v36  ;;  %2065 = vmatpush.msra.mxu0 %v3573_v55  ;;  %1178 = vmatpush.msrb.mxu3 %v1177_v31  ;;  %v4278_v31 = vld [vmem:[#allocation31_spill] sm:$0xff]  ;;  %v4283_v55 = vand.u32 4294901760, %v4276_v44 }
 0x304   : > { %1837 = vmatpush.msrb.mxu1 %v3321_v58  ;;  %1119 = vmatpush.msrb.mxu2 %v4275_v19  ;;  %4277 = vst [vmem:[#allocation14_spill] sm:$0xff] %v3604_v41  ;;  %v1200_v59 = vsub.f32 %v4272_v13, %v4279_v4  ;;  %v3620_v58 = vand.u32 4294901760, %v3526_v48 }
 0x305   : > { %2068 = vmatpush.msra.mxu0 %v3593_v36  ;;  %1184 = vmatpush.msrb.mxu3 %v1183_v29  ;;  %4280 = vst [vmem:[#allocation11_spill] sm:$0xff] %v3617_v23  ;;  %v1195_v29 = vand.u32 4294901760, %v1194_v7  ;;  %v1206_v4 = vsub.f32 %v4276_v44, %v4283_v55  ;;  %v4285_v7 = vld [vmem:[#allocation36_spill] sm:$0xff]  ;;  %v4286_v36 = vld [vmem:[#allocation35_spill] sm:$0xff] }
 0x306   : > { %1839 = vmatpush.msrb.mxu1 %v3328_v51  ;;  %1121 = vmatpush.msrb.mxu2 %v4278_v31  ;;  %v4282_v51 = vld [vmem:[#allocation33_spill] sm:$0xff]  ;;  %v3643_v55 = vsub.f32 %v3526_v48, %v3620_v58  ;;  %v3656_v48 = vand.u32 4294901760, %v3589_v10  ;;  %v1882_v27 = vpop.permute.xlu2 %1881 }
 0x307   : > { %2071 = vmatpush.msra.mxu0 %v3604_v41  ;;  %1190 = vmatpush.msrb.mxu3 %v1189_v45  ;;  %v4287_v41 = vld [vmem:[#allocation38_spill] sm:$0xff]  ;;  %v1207_v56 = vand.u32 4294901760, %v1206_v4  ;;  %v3660_v45 = vsub.f32 %v3539_v21, %v3630_v0  ;;  %v3673_v21 = vsub.f32 %v3578_v6, %v3647_v9  ;;  %v4296_v6 = vand.u32 4294901760, %v4293_v11 }
 0x308   : > { %1841 = vmatpush.msrb.mxu1 %v3410_v26  ;;  %1123 = vmatpush.msrb.mxu2 %v4282_v51  ;;  %v1201_v26 = vand.u32 4294901760, %v1200_v59  ;;  %4288 = vst [vmem:[#allocation13_spill] sm:$0xff] %v3643_v55  ;;  %v4294_v24 = vand.u32 4294901760, %v4287_v41 }
 0x309   : > { %2074 = vmatpush.msra.mxu0 %v3617_v23  ;;  %1196 = vmatpush.msrb.mxu3 %v1195_v29  ;;  %v1884_v23 = vpop.permute.xlu1 %1883  ;;  %v4290_v29 = vand.u32 4294901760, %v4281_v47  ;;  %v1880_v4 = vpop.permute.xlu0 %1879 }
 0x30a   : > { %1843 = vmatpush.msrb.mxu1 %v3397_v63  ;;  %1125 = vmatpush.msrb.mxu2 %v4286_v36  ;;  %v4291_v63 = vld [vmem:[#allocation37_spill] sm:$0xff] }
 0x30b   : > { %1646 = vmatmul.f32.vlgmr.msra.gmra.mxu1 %v3475_v38  ;;  %2077 = vmatpush.msra.mxu0 %v3634_v12  ;;  %v1212_v59 = vsub.f32 %v4281_v47, %v4290_v29  ;;  %v4292_v12 = vand.u32 4294901760, %v4285_v7 }
 0x30c   : > { %2118 = vmatpush.msra.mxu1 %v3550_v62  ;;  %1202 = vmatpush.msrb.mxu3 %v1201_v26  ;;  %v3669_v26 = vand.u32 4294901760, %v1886_v35  ;;  %v4295_v62 = vand.u32 4294901760, %v4222_v52 }
 0x30d   : > { %2080 = vmatpush.msra.mxu0 %v3643_v55  ;;  %1127 = vmatpush.msrb.mxu2 %v4291_v63  ;;  %v1218_v29 = vsub.f32 %v4285_v7, %v4292_v12  ;;  %v1213_v55 = vand.u32 4294901760, %v1212_v59  ;;  %v1224_v12 = vsub.f32 %v4287_v41, %v4294_v24  ;;  %v1230_v59 = vsub.f32 %v4293_v11, %v4296_v6 }
 0x30e   : > { %2120 = vmatpush.msra.mxu1 %v3561_v49  ;;  %1208 = vmatpush.msrb.mxu3 %v1207_v56  ;;  %v3684_v56 = vsub.f32 %v3589_v10, %v3656_v48  ;;  %v3686_v49 = vand.u32 4294901760, %v1884_v23  ;;  %v4297_v24 = vand.u32 4294901760, %v4230_v15  ;;  %v3699_v10 = vand.u32 4294901760, %v1882_v27 }
 0x30f   : > { %1133 = vmatmul.f32.vlgmr.msrb.gmra.mxu2 %v1132_v39  ;;  %2083 = vmatpush.msra.mxu0 %v3660_v45  ;;  %v1219_v39 = vand.u32 4294901760, %v1218_v29  ;;  %v1225_v52 = vand.u32 4294901760, %v1224_v12  ;;  %v3708_v6 = vand.u32 4294901760, %v1880_v4  ;;  %v1876_v12 = vpop.permute.xlu2 %1875 }
 0x310   : > { %1334 = vmatpush.msra.mxu2 %v4295_v62  ;;  %2122 = vmatpush.msra.mxu1 %v3576_v16  ;;  %v3696_v62 = vsub.f32 %v1886_v35, %v3669_v26  ;;  %v3705_v29 = vsub.f32 %v1884_v23, %v3686_v49  ;;  %v1231_v35 = vand.u32 4294901760, %v1230_v59  ;;  %v4301_v59 = vand.u32 4294901760, %v4244_v8 }
 0x311   : > { %1214 = vmatpush.msrb.mxu3 %v1213_v55  ;;  %2086 = vmatpush.msra.mxu0 %v3673_v21  ;;  %v4298_v55 = vand.u32 4294901760, %v4234_v46  ;;  %v1878_v15 = vpop.permute.xlu1 %1877  ;;  %v3715_v46 = vsub.f32 %v1882_v27, %v3699_v10  ;;  %v4302_v27 = vand.u32 4294901760, %v4247_v37 }
 0x312   : > { %1338 = vmatpush.msra.mxu2 %v4297_v24  ;;  %2124 = vmatpush.msra.mxu1 %v3587_v14  ;;  %v3717_v23 = vand.u32 4294901760, %v1878_v15  ;;  %v4300_v24 = vld [vmem:[#allocation53_spill] sm:$0xff] }
 0x313   : > { %1220 = vmatpush.msrb.mxu3 %v1219_v39  ;;  %2089 = vmatpush.msra.mxu0 %v3684_v56  ;;  %v4299_v39 = vand.u32 4294901760, %v4240_v60  ;;  %v3724_v60 = vand.u32 4294901760, %v1876_v12 }
 0x314   : > { %1342 = vmatpush.msra.mxu2 %v4298_v55  ;;  %2126 = vmatpush.msra.mxu1 %v3607_v33  ;;  %v3727_v55 = vsub.f32 %v1880_v4, %v3708_v6  ;;  %v4305_v4 = vand.u32 4294901760, %v4259_v25  ;;  %v1859_v25 = vstv %s2410_s29 }
 0x315   : > { %1226 = vmatpush.msrb.mxu3 %v1225_v52  ;;  %2092 = vmatpush.msra.mxu0 %v3696_v62  ;;  %v1874_v52 = vpop.permute.xlu0 %1873  ;;  %v3745_v37 = vsub.f32 %v1876_v12, %v3724_v60 }
 0x316   : > { %1346 = vmatpush.msra.mxu2 %v4299_v39  ;;  %2128 = vmatpush.msra.mxu1 %v3620_v58  ;;  %v3734_v8 = vand.u32 4294901760, %v1874_v52 }
 0x317   : > { %1232 = vmatpush.msrb.mxu3 %v1231_v35  ;;  %2095 = vmatpush.msra.mxu0 %v3705_v29  ;;  %v4303_v35 = vand.u32 4294901760, %v4250_v32 }
 0x318   : > { %1234 = vmatmul.f32.vlgmr.msrb.gmra.mxu3 %v4300_v24  ;;  %1350 = vmatpush.msra.mxu2 %v4301_v59  ;;  %v3753_v32 = vsub.f32 %v1874_v52, %v3734_v8  ;;  %v1854_v59 = vstv %s2409_s10  ;;  %v4333_v52 = vld [vmem:[#allocation68_spill] sm:$0xff] }
 0x319   : > { %1401 = vmatpush.msra.mxu3 %v4226_v3  ;;  %2130 = vmatpush.msra.mxu1 %v3630_v0  ;;  %v3737_v3 = vsub.f32 %v1878_v15, %v3717_v23  ;;  %v4331_v15 = vld [vmem:[#allocation70_spill] sm:$0xff] }
 0x31a   : > { %1354 = vmatpush.msra.mxu2 %v4302_v27  ;;  %2098 = vmatpush.msra.mxu0 %v3715_v46 }
 0x31b   : > { %1403 = vmatpush.msra.mxu3 %v4231_v22  ;;  %2132 = vmatpush.msra.mxu1 %v3647_v9  ;;  %v4304_v22 = vand.u32 4294901760, %v4253_v20  ;;  %v4306_v20 = vand.u32 4294901760, %v4265_v28  ;;  %v4329_v28 = vld [vmem:[#allocation65_spill] sm:$0xff] }
 0x31c   : > { %1358 = vmatpush.msra.mxu2 %v4303_v35  ;;  %2101 = vmatpush.msra.mxu0 %v3727_v55 }
 0x31d   : > { %1405 = vmatpush.msra.mxu3 %v4235_v30  ;;  %2134 = vmatpush.msra.mxu1 %v3656_v48  ;;  %v4307_v30 = vand.u32 4294901760, %v4272_v13  ;;  %v2463_v13 = vld [vmem:[%s2967_s16] sm:$0x3]  ;;  %s361_s16 = scalar_lea.vmem %s3965_s8, %s2377_s11 }
 0x31e   : > { %1362 = vmatpush.msra.mxu2 %v4304_v22  ;;  %2104 = vmatpush.msra.mxu0 %v3737_v3  ;;  %v4334_v22 = vld [vmem:[#allocation12_spill] sm:$0xff] }
 0x31f   : > { %1407 = vmatpush.msra.mxu3 %v4241_v57  ;;  %2136 = vmatpush.msra.mxu1 %v3669_v26  ;;  %v4308_v57 = vand.u32 4294901760, %v4276_v44  ;;  %v4311_v44 = vand.u32 4294901760, %v4287_v41  ;;  %v4326_v41 = vld [vmem:[#allocation47_spill] sm:$0xff] }
 0x320   : > { %1366 = vmatpush.msra.mxu2 %v4305_v4  ;;  %2107 = vmatpush.msra.mxu0 %v3745_v37  ;;  %v1964_v4 = vand.u32 4294901760, %v4334_v22 }
 0x321   : > { %1409 = vmatpush.msra.mxu3 %v4245_v40  ;;  %2138 = vmatpush.msra.mxu1 %v3686_v49  ;;  %v4327_v40 = vld [vmem:[#allocation63_spill] sm:$0xff] }
 0x322   : > { %1370 = vmatpush.msra.mxu2 %v4306_v20  ;;  %2110 = vmatpush.msra.mxu0 %v3753_v32  ;;  %v4335_v20 = vld [vmem:[#allocation64_spill] sm:$0xff] }
 0x323   : > { %1411 = vmatpush.msra.mxu3 %v4248_v5  ;;  %2140 = vmatpush.msra.mxu1 %v3699_v10  ;;  %v4309_v5 = vand.u32 4294901760, %v4281_v47  ;;  %v1851_v47 = vstv %s2408_s30 }
 0x324   : > { %1374 = vmatpush.msra.mxu2 %v4307_v30  ;;  %1808 = vmatmul.f32.vlgmr.msrb.gmra.mxu0 %v3475_v38  ;;  %v1852_v39 = vsub.f32 %v2463_v13, %v1851_v47  ;;  %v4336_v30 = vld [vmem:[#allocation42_spill] sm:$0xff] }
 0x325   : > { %1413 = vmatpush.msra.mxu3 %v4251_v34  ;;  %2142 = vmatpush.msra.mxu1 %v3708_v6  ;;  %v4310_v34 = vand.u32 4294901760, %v4285_v7  ;;  %v1862_v7 = vstv %s2411_s9 }
 0x326   : > { %1378 = vmatpush.msra.mxu2 %v4308_v57  ;;  %1845 = vmatmul.f32.vlgmr.msrb.gmra.mxu1 %v3475_v38  ;;  %v4324_v38 = vld [vmem:[#allocation46_spill] sm:$0xff]  ;;  %v1855_v27 = vmul.f32 %v1854_v59, %v1852_v39 }
 0x327   : > { %1415 = vmatpush.msra.mxu3 %v4254_v54  ;;  %2144 = vmatpush.msra.mxu1 %v3717_v23  ;;  %v4312_v54 = vand.u32 4294901760, %v4293_v11  ;;  %v4323_v11 = vld [vmem:[#allocation57_spill] sm:$0xff]  ;;  %v4337_v57 = vld [vmem:[#allocation10_spill] sm:$0xff] }
 0x328   : > { %1382 = vmatpush.msra.mxu2 %v4309_v5  ;;  %v1856_v5 = vmul.f32 %v1855_v27, %v1852_v39 }
 0x329   : > { %1417 = vmatpush.msra.mxu3 %v4260_v2  ;;  %2146 = vmatpush.msra.mxu1 %v3724_v60  ;;  %v4325_v2 = vld [vmem:[#allocation66_spill] sm:$0xff] }
 0x32a   : > { %1386 = vmatpush.msra.mxu2 %v4310_v34 }
 0x32b   : > { %1419 = vmatpush.msra.mxu3 %v4266_v61  ;;  %2148 = vmatpush.msra.mxu1 %v3734_v8  ;;  %v4328_v61 = vld [vmem:[#allocation56_spill] sm:$0xff] }
 0x32c   : > { %1390 = vmatpush.msra.mxu2 %v4311_v44  ;;  %v4338_v44 = vld [vmem:[#allocation9_spill] sm:$0xff] }
 0x32d   : > { %1421 = vmatpush.msra.mxu3 %v4271_v17  ;;  %v4314_v17 = vld [vmem:[#allocation40_spill] sm:$0xff] }
 0x32e   : > { %1394 = vmatpush.msra.mxu2 %v4312_v54  ;;  %v1970_v54 = vand.u32 4294901760, %v4338_v44 }
 0x32f   : > { %1423 = vmatpush.msra.mxu3 %v4275_v19  ;;  %1396 = vmatmul.f32.vlgmr.msra.gmra.mxu2 %v4300_v24  ;;  %v4318_v19 = vld [vmem:[#allocation43_spill] sm:$0xff] }
 0x330   : > { %1652 = vmatpush.msrb.mxu2 %v3143_v50  ;;  %v4313_v50 = vld [vmem:[#allocation51_spill] sm:$0xff] }
 0x331   : > { %1425 = vmatpush.msra.mxu3 %v4278_v31  ;;  %v4330_v31 = vld [vmem:[#allocation52_spill] sm:$0xff] }
 0x332   : > { %1655 = vmatpush.msrb.mxu2 %v3129_v1  ;;  %v4315_v1 = vld [vmem:[#allocation48_spill] sm:$0xff] }
 0x333   : > { %1427 = vmatpush.msra.mxu3 %v4282_v51  ;;  %v4316_v51 = vld [vmem:[#allocation45_spill] sm:$0xff] }
 0x334   : > { %1658 = vmatpush.msrb.mxu2 %v3221_v53  ;;  %v4317_v53 = vld [vmem:[#allocation49_spill] sm:$0xff] }
 0x335   : > { %1429 = vmatpush.msra.mxu3 %v4286_v36  ;;  %v1860_v36 = vsub.f32 %v2463_v13, %v1859_v25  ;;  %v4348_v13 = vld [vmem:[#allocation13_spill] sm:$0xff] }
 0x336   : > { %1661 = vmatpush.msrb.mxu2 %v3203_v42  ;;  %v4319_v42 = vld [vmem:[#allocation58_spill] sm:$0xff] }
 0x337   : > { %1431 = vmatpush.msra.mxu3 %v4291_v63  ;;  %v4320_v63 = vld [vmem:[#allocation44_spill] sm:$0xff]  ;;  %v1863_v12 = vmul.f32 %v1862_v7, %v1860_v36  ;;  %v2000_v7 = vand.u32 4294901760, %v3660_v45 }
 0x338   : > { %1433 = vmatmul.f32.vlgmr.msra.gmra.mxu3 %v4300_v24  ;;  %1664 = vmatpush.msrb.mxu2 %v3210_v43  ;;  %v4321_v43 = vld [vmem:[#allocation55_spill] sm:$0xff]  ;;  %v4332_v24 = vld [vmem:[#allocation54_spill] sm:$0xff] }
 0x339   : > { %1705 = vmatpush.msrb.mxu3 %v3133_v18  ;;  %v4322_v18 = vld [vmem:[#allocation50_spill] sm:$0xff]  ;;  %v1864_v35 = vmul.f32 %v1863_v12, %v1860_v36  ;;  %v1994_v36 = vand.u32 4294901760, %v4348_v13 }
 0x33a   : > { %1667 = vmatpush.msrb.mxu2 %v4313_v50  ;;  %v4339_v50 = vld [vmem:[#allocation59_spill] sm:$0xff] }
 0x33b   : > { %1707 = vmatpush.msrb.mxu3 %v4314_v17  ;;  %v1866_v34 = vrot.slane %v1864_v35, 1  ;;  %v4340_v17 = vld [vmem:[#allocation8_spill] sm:$0xff]  ;;  %v2012_v35 = vand.u32 4294901760, %v3684_v56 }
 0x33c   : > { %1670 = vmatpush.msrb.mxu2 %v4315_v1 }
 0x33d   : > { %1709 = vmatpush.msrb.mxu3 %v4316_v51  ;;  %v1868_v1 = vadd.f32 %v1866_v34, %v1856_v5  ;;  %v1965_v51 = vsub.f32 %v4334_v22, %v1964_v4  ;;  %v4349_v5 = vld [vmem:[#allocation41_spill] sm:$0xff] }
 0x33e   : > { %1673 = vmatpush.msrb.mxu2 %v4317_v53  ;;  %v4341_v53 = vld [vmem:[#allocation14_spill] sm:$0xff] }
 0x33f   : > { %1711 = vmatpush.msrb.mxu3 %v4318_v19  ;;  %v1976_v19 = vand.u32 4294901760, %v4341_v53 }
 0x340   : > { %1676 = vmatpush.msrb.mxu2 %v4319_v42  ;;  %v4342_v42 = vld [vmem:[#allocation60_spill] sm:$0xff] }
 0x341   : > { %1713 = vmatpush.msrb.mxu3 %v4320_v63  ;;  %v1869_v63 = vmul.f32 1.442695, %v1868_v1  ;;  %v1977_v25 = vsub.f32 %v4341_v53, %v1976_v19 }
 0x342   : > { %1679 = vmatpush.msrb.mxu2 %v4321_v43  ;;  %v4343_v43 = vld [vmem:[#allocation11_spill] sm:$0xff] }
 0x343   : > { %1715 = vmatpush.msrb.mxu3 %v4322_v18  ;;  %v1982_v18 = vand.u32 4294901760, %v4343_v43  ;;  %2461 = vpow2.f32 %v1869_v63  ;;  %v2024_v63 = vand.u32 4294901760, %v3705_v29 }
 0x344   : > { %1682 = vmatpush.msrb.mxu2 %v4323_v11  ;;  %v4344_v11 = vld [vmem:[#allocation69_spill] sm:$0xff] }
 0x345   : > { %1717 = vmatpush.msrb.mxu3 %v4324_v38  ;;  %v1971_v38 = vsub.f32 %v4338_v44, %v1970_v54  ;;  %v1983_v47 = vsub.f32 %v4343_v43, %v1982_v18 }
 0x346   : > { %1685 = vmatpush.msrb.mxu2 %v4325_v2  ;;  %v1966_v2 = vand.u32 4294901760, %v1965_v51 }
 0x347   : > { %1719 = vmatpush.msrb.mxu3 %v4326_v41  ;;  %v4345_v41 = vld [vmem:[#allocation16_spill] sm:$0xff]  ;;  %v1984_v59 = vand.u32 4294901760, %v1983_v47  ;;  %v2036_v47 = vand.u32 4294901760, %v3727_v55 }
 0x348   : > { %1688 = vmatpush.msrb.mxu2 %v4327_v40  ;;  %v1988_v40 = vand.u32 4294901760, %v4345_v41 }
 0x349   : > { %1721 = vmatpush.msrb.mxu3 %v4328_v61  ;;  %v4346_v61 = vld [vmem:[#allocation67_spill] sm:$0xff]  ;;  %v2462_v12 = vpop.eup %2461 }
 0x34a   : > { %1691 = vmatpush.msrb.mxu2 %v4329_v28  ;;  %v4347_v28 = vand.u32 4294901760, %v4337_v57  ;;  %v1989_v39 = vsub.f32 %v4345_v41, %v1988_v40  ;;  %v1871_v27 = vperm.slane %v2462_v12, 0 }
 0x34b   : > { %1723 = vmatpush.msrb.mxu3 %v4330_v31  ;;  %v1972_v31 = vand.u32 4294901760, %v1971_v38  ;;  %v2013_v38 = vsub.f32 %v3684_v56, %v2012_v35 }
 0x34c   : > { %1694 = vmatpush.msrb.mxu2 %v4331_v15  ;;  %v1978_v15 = vand.u32 4294901760, %v1977_v25  ;;  %v1872_v34 = vmul.f32 %v1871_v27, %v4349_v5  ;;  %v2037_v5 = vsub.f32 %v3727_v55, %v2036_v47 }
 0x34d   : > { %1725 = vmatpush.msrb.mxu3 %v4332_v24  ;;  %v2006_v24 = vand.u32 4294901760, %v3673_v21 }
 0x34e   : > { %1697 = vmatpush.msrb.mxu2 %v4333_v52  ;;  %v1995_v52 = vsub.f32 %v4348_v13, %v1994_v36 }
 0x34f   : > { %1727 = vmatpush.msrb.mxu3 %v4335_v20  ;;  %1700 = vmatmul.f32.vlgmr.msrb.gmra.mxu2 %v4337_v57  ;;  %v1990_v20 = vand.u32 4294901760, %v1989_v39  ;;  %v2001_v57 = vsub.f32 %v3660_v45, %v2000_v7  ;;  %v2007_v51 = vsub.f32 %v3673_v21, %v2006_v24  ;;  %v2025_v39 = vsub.f32 %v3705_v29, %v2024_v63 }
 0x350   : > { %1922 = vmatpush.msra.mxu2 %v4336_v30  ;;  %v1996_v1 = vand.u32 4294901760, %v1995_v52 }
 0x351   : > { %1729 = vmatpush.msrb.mxu3 %v4339_v50  ;;  %v2018_v50 = vand.u32 4294901760, %v3696_v62  ;;  %v2008_v25 = vand.u32 4294901760, %v2007_v51 }
 0x352   : > { %1924 = vmatpush.msra.mxu2 %v4340_v17 }
 0x353   : > { %1731 = vmatpush.msrb.mxu3 %v4342_v42  ;;  %v3876_v42 = vand.u32 4294901760, %v1872_v34 }
 0x354   : > { %1926 = vmatpush.msra.mxu2 %v3576_v16 }
 0x355   : > { %1733 = vmatpush.msrb.mxu3 %v4344_v11  ;;  %v2002_v11 = vand.u32 4294901760, %v2001_v57  ;;  %v2026_v57 = vand.u32 4294901760, %v2025_v39  ;;  %v2454_v39 = vld [vmem:[%s3964_s7] ss:$0 sm:$0xff] }
 0x356   : > { %1928 = vmatpush.msra.mxu2 %v3587_v14 }
 0x357   : > { %1735 = vmatpush.msrb.mxu3 %v4346_v61  ;;  %v2030_v61 = vand.u32 4294901760, %v3715_v46 }
 0x358   : > { %1930 = vmatpush.msra.mxu2 %v3607_v33  ;;  %1739 = vmatmul.f32.vlgmr.msrb.gmra.mxu3 %v4347_v28  ;;  %v2019_v28 = vsub.f32 %v3696_v62, %v2018_v50 }
 0x359   : > { %1967 = vmatpush.msra.mxu3 %v1966_v2  ;;  %v1954_v2 = vsub.f32 %v1872_v34, %v3876_v42  ;;  %v2031_v27 = vsub.f32 %v3715_v46, %v2030_v61  ;;  %v2038_v46 = vand.u32 4294901760, %v2037_v5 }
 0x35a   : > { %1932 = vmatpush.msra.mxu2 %v3620_v58  ;;  %v2020_v52 = vand.u32 4294901760, %v2019_v28 }
 0x35b   : > { %1973 = vmatpush.msra.mxu3 %v1972_v31  ;;  %v1955_v31 = vand.u32 4294901760, %v1954_v2  ;;  %2113 = vmatmul.f32.vlgmr.msra.gmra.mxu0 %v1954_v2  ;;  %v2032_v51 = vand.u32 4294901760, %v2031_v27 }
 0x35c   : > { %1934 = vmatpush.msra.mxu2 %v3630_v0 }
 0x35d   : > { %1979 = vmatpush.msra.mxu3 %v1978_v15  ;;  %v2014_v15 = vand.u32 4294901760, %v2013_v38  ;;  %v1956_v12 = vsub.f32 %v1954_v2, %v1955_v31  ;;  %2152 = vmatmul.f32.vlgmr.msra.gmra.mxu1 %v1955_v31 }
 0x35e   : > { %1936 = vmatpush.msra.mxu2 %v3647_v9 }
 0x35f   : > { %1985 = vmatpush.msra.mxu3 %v1984_v59  ;;  %v2042_v59 = vand.u32 4294901760, %v3737_v3  ;;  %v1957_v34 = vand.u32 4294901760, %v1956_v12 }
 0x360   : > { %1938 = vmatpush.msra.mxu2 %v3656_v48 }
 0x361   : > { %1991 = vmatpush.msra.mxu3 %v1990_v20  ;;  %v2048_v20 = vand.u32 4294901760, %v3745_v37 }
 0x362   : > { %1940 = vmatpush.msra.mxu2 %v3669_v26 }
 0x363   : > { %1997 = vmatpush.msra.mxu3 %v1996_v1  ;;  %v2054_v1 = vand.u32 4294901760, %v3753_v32  ;;  %v2049_v38 = vsub.f32 %v3745_v37, %v2048_v20 }
 0x364   : > { %1942 = vmatpush.msra.mxu2 %v3686_v49 }
 0x365   : > { %2003 = vmatpush.msra.mxu3 %v2002_v11  ;;  %v2043_v11 = vsub.f32 %v3737_v3, %v2042_v59  ;;  %v2055_v2 = vsub.f32 %v3753_v32, %v2054_v1  ;;  %v2050_v3 = vand.u32 4294901760, %v2049_v38 }
 0x366   : > { %1944 = vmatpush.msra.mxu2 %v3699_v10 }
 0x367   : > { %2009 = vmatpush.msra.mxu3 %v2008_v25  ;;  %v2044_v55 = vand.u32 4294901760, %v2043_v11  ;;  %v2056_v22 = vand.u32 4294901760, %v2055_v2 }
 0x368   : > { %1946 = vmatpush.msra.mxu2 %v3708_v6 }
 0x369   : > { %2015 = vmatpush.msra.mxu3 %v2014_v15 }
 0x36a   : > { %1948 = vmatpush.msra.mxu2 %v3717_v23 }
 0x36b   : > { %2021 = vmatpush.msra.mxu3 %v2020_v52 }
 0x36c   : > { %1950 = vmatpush.msra.mxu2 %v3724_v60 }
 0x36d   : > { %2027 = vmatpush.msra.mxu3 %v2026_v57 }
 0x36e   : > { %1952 = vmatpush.msra.mxu2 %v3734_v8 }
 0x36f   : > { %2033 = vmatpush.msra.mxu3 %v2032_v51  ;;  %1958 = vmatmul.f32.vlgmr.msra.gmra.mxu2 %v1957_v34 }
 0x370   : > { %2159 = vmatpush.msrb.mxu2 %v1964_v4 }
 0x371   : > { %2039 = vmatpush.msra.mxu3 %v2038_v46 }
 0x372   : > { %2163 = vmatpush.msrb.mxu2 %v1970_v54 }
 0x373   : > { %2045 = vmatpush.msra.mxu3 %v2044_v55 }
 0x374   : > { %2167 = vmatpush.msrb.mxu2 %v1976_v19 }
 0x375   : > { %2051 = vmatpush.msra.mxu3 %v2050_v3 }
 0x376   : > { %2171 = vmatpush.msrb.mxu2 %v1982_v18 }
 0x377   : > { %2057 = vmatpush.msra.mxu3 %v2056_v22 }
 0x378   : > { %2175 = vmatpush.msrb.mxu2 %v1988_v40  ;;  %2059 = vmatmul.f32.vlgmr.msra.gmra.mxu3 %v3876_v42 }
 0x379   : > { %2226 = vmatpush.msrb.mxu3 %v4336_v30 }
 0x37a   : > { %2179 = vmatpush.msrb.mxu2 %v1994_v36 }
 0x37b   : > { %2228 = vmatpush.msrb.mxu3 %v4340_v17 }
 0x37c   : > { %2183 = vmatpush.msrb.mxu2 %v2000_v7 }
 0x37d   : > { %2230 = vmatpush.msrb.mxu3 %v3576_v16 }
 0x37e   : > { %2187 = vmatpush.msrb.mxu2 %v2006_v24 }
 0x37f   : > { %2232 = vmatpush.msrb.mxu3 %v3587_v14 }
 0x380   : > { %2191 = vmatpush.msrb.mxu2 %v2012_v35 }
 0x381   : > { %2234 = vmatpush.msrb.mxu3 %v3607_v33  ;;  %v894_v33 = vpop.f32.mrf.mxu3 }
 0x382   : > { %2195 = vmatpush.msrb.mxu2 %v2018_v50 }
 0x383   : > { %2236 = vmatpush.msrb.mxu3 %v3620_v58  ;;  %v793_v58 = vpop.f32.mrf.mxu2 }
 0x384   : > { %2199 = vmatpush.msrb.mxu2 %v2024_v63 }
 0x385   : > { %2238 = vmatpush.msrb.mxu3 %v3630_v0 }
 0x386   : > { %2203 = vmatpush.msrb.mxu2 %v2030_v61 }
 0x387   : > { %2240 = vmatpush.msrb.mxu3 %v3647_v9 }
 0x388   : > { %2207 = vmatpush.msrb.mxu2 %v2036_v47 }
 0x389   : > { %2242 = vmatpush.msrb.mxu3 %v3656_v48  ;;  %v987_v16 = vpop.f32.mrf.mxu3  ;;  %v1289_v48 = vpop.f32.mrf.mxu0 }
 0x38a   : > { %2211 = vmatpush.msrb.mxu2 %v2042_v59 }
 0x38b   : > { %2244 = vmatpush.msrb.mxu3 %v3669_v26  ;;  %v948_v14 = vpop.f32.mrf.mxu2  ;;  %v1328_v26 = vpop.f32.mrf.mxu1 }
 0x38c   : > { %2215 = vmatpush.msrb.mxu2 %v2048_v20 }
 0x38d   : > { %2246 = vmatpush.msrb.mxu3 %v3686_v49 }
 0x38e   : > { %2219 = vmatpush.msrb.mxu2 %v2054_v1 }
 0x38f   : > { %2221 = vmatmul.f32.vlgmr.msrb.gmra.mxu2 %v3876_v42  ;;  %2248 = vmatpush.msrb.mxu3 %v3699_v10  ;;  %v895_v10 = vadd.f32 %v894_v33, %v793_v58 }
 0x391   : > { %2250 = vmatpush.msrb.mxu3 %v3708_v6  ;;  %v1093_v49 = vpop.f32.mrf.mxu3  ;;  %v1546_v62 = vpop.f32.mrf.mxu0  ;;  %v949_v6 = vadd.f32 %v948_v14, %v895_v10 }
 0x393   : > { %2252 = vmatpush.msrb.mxu3 %v3717_v23  ;;  %v1056_v0 = vpop.f32.mrf.mxu2  ;;  %v1647_v29 = vpop.f32.mrf.mxu1 }
 0x394   : > { %v1648_v4 = vadd.f32 %v1647_v29, %v1546_v62 }
 0x395   : > { %2254 = vmatpush.msrb.mxu3 %v3724_v60 }
 0x397   : > { %2256 = vmatpush.msrb.mxu3 %v3734_v8  ;;  %v988_v8 = vadd.f32 %v987_v16, %v949_v6 }
 0x398   : > { %2258 = vmatmul.f32.vlgmr.msrb.gmra.mxu3 %v3876_v42 }
 0x399   : > { %v1057_v32 = vadd.f32 %v1056_v0, %v988_v8 }
 0x39b   : > { %v1235_v45 = vpop.f32.mrf.mxu3  ;;  %v1134_v9 = vpop.f32.mrf.mxu2  ;;  %v1094_v30 = vadd.f32 %v1093_v49, %v1057_v32 }
 0x39d   : > { %v1135_v17 = vadd.f32 %v1134_v9, %v1094_v30 }
 0x39f   : > { %v1236_v43 = vadd.f32 %v1235_v45, %v1135_v17 }
 0x3a1   : > { %v1809_v37 = vpop.f32.mrf.mxu0  ;;  %v1290_v13 = vadd.f32 %v1289_v48, %v1236_v43 }
 0x3a3   : > { %v1846_v44 = vpop.f32.mrf.mxu1  ;;  %v1329_v35 = vadd.f32 %v1328_v26, %v1290_v13 }
 0x3b2   : > { %v1397_v56 = vpop.f32.mrf.mxu2 }
 0x3b3   : > { %v1398_v63 = vadd.f32 %v1397_v56, %v1329_v35 }
 0x3bb   : > { %v1434_v21 = vpop.f32.mrf.mxu3 }
 0x3bc   : > { %v1435_v25 = vadd.f32 %v1434_v21, %v1398_v63 }
 0x3d2   : > { %v1701_v60 = vpop.f32.mrf.mxu2 }
 0x3d3   : > { %v1702_v53 = vadd.f32 %v1701_v60, %v1648_v4 }
 0x3d8   : > { %v2114_v41 = vpop.f32.mrf.mxu0 }
 0x3da   : > { %v2153_v7 = vpop.f32.mrf.mxu1 }
 0x3db   : > { %v1740_v23 = vpop.f32.mrf.mxu3 }
 0x3dc   : > { %v1741_v40 = vadd.f32 %v1740_v23, %v1702_v53 }
 0x3de   : > { %v1810_v24 = vadd.f32 %v1809_v37, %v1741_v40 }
 0x3e0   : > { %v1847_v61 = vadd.f32 %v1846_v44, %v1810_v24 }
 0x3e2   : > { %v1849_v47 = vadd.f32 %v1847_v61, %v1435_v25 }
 0x3f2   : > { %v1959_v19 = vpop.f32.mrf.mxu2 }
 0x3fb   : > { %v2060_v54 = vpop.f32.mrf.mxu3 }
 0x3fc   : > { %v2061_v18 = vadd.f32 %v2060_v54, %v1959_v19 }
 0x3fe   : > { %v2115_v36 = vadd.f32 %v2114_v41, %v2061_v18 }
 0x400   : > { %v2154_v50 = vadd.f32 %v2153_v7, %v2115_v36 }
 0x412   : > { %v2222_v42 = vpop.f32.mrf.mxu2 }
 0x413   : > { %v2223_v28 = vadd.f32 %v2222_v42, %v2154_v50 }
 0x41b   : > { %v2259_v31 = vpop.f32.mrf.mxu3 }
 0x41c   : > { %v2260_v15 = vadd.f32 %v2259_v31, %v2223_v28 }
 0x41e   : > { %v2262_v12 = vadd.f32 %v2260_v15, %v1849_v47 }
 0x420   : > { %v2267_v59 = vadd.f32 %v2454_v39, %v2262_v12 }
 0x422   : > { %2268 = vst.msk [vmem:[%s361_s16] sm:$0xff] %vm560_vm3, %v2267_v59 }
 0x423 PF: > { %s20_s27 = sadd.s32 1, %s2508_s27  }
 0x424   : > { %p17_p7 = scmp.ge.s32.totalorder %s20_s27, 4  }
 0x426   :  { %19 = sbr.rel (!%p17_p7) target bundleno = 2 (0x2), region = 97 }
 0x42b   :  { %2288 = vsyncpa [#allocation3], 1 }
 0x42c   :  { %2290 = vsyncpa [#allocation3 + $0x1], 1 }
 0x42d   :  { %2291 = vsyncpa [#allocation5], 1 }

</bundles_post_ra>
